<compile_context>
chip_gen: v6e
topology: v6e:2x2x1
jax: 0.10.0
libtpu: 0.0.40
codegen_flags: <defaults>
</compile_context>

<pallas_src>
import functools

import jax
import jax.numpy as jnp
from jax.experimental import pallas as pl
from jax.experimental.pallas import tpu as pltpu


# ----------------------------- kernel -------------------------------------- #

def _elementwise_kernel(fn, x_ref, o_ref):
    # Generic elementwise tile kernel: o = fn(x).  Pure VPU work; HBM-bound.
    o_ref[...] = fn(x_ref[...]).astype(o_ref.dtype)


# --------------------------- dispatch helpers ------------------------------ #

_LANE = 128
_PALLAS_MIN_BYTES = 1 << 20      # below this, plain XLA wins (dispatch overhead)
_TARGET_TILE_BYTES = 1 << 20     # ~1 MiB input tile -> ~4 MiB double-buffered VMEM


def _pick_cols(total):
    """Largest lane-dense column count (multiple of 128) dividing `total`."""
    for c in (1024, 512, 256, _LANE):
        if total % c == 0:
            return c
    return None   # not lane-densifiable without a copy -> caller uses plain XLA


def _pick_row_tile(rows, cols, itemsize):
    """Row tile from a single byte budget; force >= 2 grid steps for v7x TCs."""
    tile_r = max(8, min(rows, _TARGET_TILE_BYTES // (cols * itemsize)))
    tile_r = max(8, (tile_r // 8) * 8)
    if rows > 8 and pl.cdiv(rows, tile_r) < 2:
        tile_r = max(8, (rows // 2 // 8) * 8)
    return tile_r


def _apply_elementwise(x, fn, donate=False):
    """Apply a shape/dtype-preserving elementwise fn.

    Lane-dense tiled Pallas kernel for large, 128-divisible tensors; plain XLA
    otherwise (tiny tensors or totals not divisible by 128 -- never lane-sparse).
    """
    total = x.size
    nbytes = total * x.dtype.itemsize
    cols = _pick_cols(total)
    if cols is None or nbytes < _PALLAS_MIN_BYTES:
        return fn(x)

    rows = total // cols
    x2 = x.reshape(rows, cols)                  # metadata-only (contiguous array)
    tile_r = _pick_row_tile(rows, cols, x.dtype.itemsize)
    extra = {"input_output_aliases": {0: 0}} if donate else {}
    out = pl.pallas_call(
        functools.partial(_elementwise_kernel, fn),
        out_shape=jax.ShapeDtypeStruct((rows, cols), x.dtype),
        grid=(pl.cdiv(rows, tile_r),),          # partial final tile is masked
        in_specs=[pl.BlockSpec((tile_r, cols), lambda i: (i, 0))],
        out_specs=pl.BlockSpec((tile_r, cols), lambda i: (i, 0)),
        compiler_params=pltpu.CompilerParams(
            dimension_semantics=("parallel",)),
        **extra,
    )(x2)
    return out.reshape(x.shape)


# ----------------------------- elementwise maps ----------------------------- #

def _mul_zero(v):
    # torch .mul(0.) semantics: NaN / Inf propagate to NaN.
    return v * jnp.zeros((), dtype=v.dtype)


def _relu(v):
    return jnp.maximum(v, jnp.zeros((), dtype=v.dtype))


# ------------------------------ primitives ---------------------------------- #

class AbstractPrimitive:
    """Minimal JAX analogue of primitives.AbstractPrimitive."""

    # Optional: a shape/dtype-preserving elementwise map (v -> v).  When not
    # None, Sequential fuses consecutive primitives into one Pallas kernel.
    elementwise_fn = None

    def forward(self, x, edge_data=None):
        raise NotImplementedError

    def forward_beforeGP(self, x, edge_data=None):
        return self.forward(x, edge_data)

    def get_embedded_ops(self):
        return None

    def __call__(self, x, edge_data=None):
        return self.forward(x, edge_data)

    @property
    def get_op_name(self):
        return type(self).__name__


class ReLU(AbstractPrimitive):
    """Elementwise ReLU edge primitive (fusable)."""

    elementwise_fn = staticmethod(_relu)

    def forward(self, x, edge_data=None):
        return _apply_elementwise(x, _relu)

    def get_embedded_ops(self):
        return None


class Zero(AbstractPrimitive):
    """NAS `Zero` edge primitive (x.mul(0.) semantics: NaN / Inf -> NaN)."""

    def __init__(self, stride=1, C_in=None, C_out=None):
        self.stride, self.C_in, self.C_out = stride, C_in, C_out

    @property
    def elementwise_fn(self):
        # Only the shape-preserving branch is fusable.
        same_c = (self.C_in is None or self.C_out is None
                  or self.C_in == self.C_out)
        return _mul_zero if (self.stride == 1 and same_c) else None

    def forward(self, x, edge_data=None):
        N, C, H, W = x.shape
        c_in = C if self.C_in is None else self.C_in
        c_out = C if self.C_out is None else self.C_out
        s = self.stride
        if c_in == c_out:
            if s == 1:
                return _apply_elementwise(x, _mul_zero)
            # Reference: x[:, :, ::s, ::s].mul(0.).  The slice is stride^2 x
            # smaller (tiny for NAS shapes); path is decided at trace time,
            # no host sync, no strided lane reads.
            # TODO(synk): a lane-dense strided Pallas kernel would need a
            # physical NCHW -> (H, W, N*C) transpose; not worth it at these sizes.
            return _apply_elementwise(x[:, :, ::s, ::s], _mul_zero)
        # Reference: x.new_zeros((N, C_out, (H+1)//s, (W+1)//s)).  Pure fill,
        # no NaN propagation -- let XLA fuse the broadcast into the consumer.
        # (The (H+1)//s vs ceil(H/s) asymmetry mirrors the PyTorch reference.)
        return jnp.zeros((N, c_out, (H + 1) // s, (W + 1) // s), x.dtype)

    def get_embedded_ops(self):
        return None


class Sequential(AbstractPrimitive):
    """JAX/Pallas analogue of primitives.Sequential: applies embedded ops in order.

    Runs of consecutive elementwise primitives are fused into a single Pallas
    kernel (one HBM read + one write per run) -- pallas_call is opaque to XLA,
    so this fusion cannot happen automatically.
    """

    def __init__(self, *args, **kwargs):
        self.primitives = args

    def forward(self, x, edge_data=None):
        pending = []

        def flush(v):
            if not pending:
                return v
            fns = tuple(pending)
            pending.clear()
            if len(fns) == 1:
                return _apply_elementwise(v, fns[0])

            def composed(u, _fns=fns):
                for f in _fns:
                    u = f(u)
                return u

            return _apply_elementwise(v, composed)

        for op in self.primitives:
            fn = getattr(op, "elementwise_fn", None)
            if fn is not None:
                pending.append(fn)
            else:
                x = flush(x)
                x = op(x)
        return flush(x)

    def forward_beforeGP(self, x, edge_data=None):
        return self.forward(x, edge_data)

    def get_embedded_ops(self):
        return list(self.primitives)


# ---------------------------------- test ------------------------------------ #

if __name__ == "__main__":
    key = jax.random.PRNGKey(0)

    # --- small shape consistent with the module (XLA fast path) ------------- #
    N, C, H, W = 2, 4, 16, 16
    x = jax.random.normal(key, (N, C, H, W), dtype=jnp.float32)
    # NaN / Inf probes: x.mul(0.) must propagate them (NaN stays NaN, Inf*0 -> NaN).
    x = x.at[0, 0, 0, 0].set(jnp.nan)
    x = x.at[1, 2, 3, 4].set(jnp.inf)

    # Zero: C_in == C_out, stride == 1 -> x * 0
    out1 = Zero(stride=1, C_in=C, C_out=C)(x)
    jax.block_until_ready(out1)
    ref1 = x * 0.0
    assert out1.shape == ref1.shape and out1.dtype == ref1.dtype
    assert jnp.array_equal(out1, ref1, equal_nan=True)

    # Zero: stride == 2 -> x[:, :, ::2, ::2] * 0
    out2 = Zero(stride=2, C_in=C, C_out=C)(x)
    jax.block_until_ready(out2)
    ref2 = x[:, :, ::2, ::2] * 0.0
    assert out2.shape == ref2.shape and jnp.array_equal(out2, ref2, equal_nan=True)

    # Zero: C_in != C_out -> zeros of shape (N, C_out, (H+1)//s, (W+1)//s)
    out3 = Zero(stride=2, C_in=C, C_out=8)(x)
    jax.block_until_ready(out3)
    assert out3.shape == (N, 8, (H + 1) // 2, (W + 1) // 2)
    assert out3.dtype == x.dtype and bool(jnp.all(out3 == 0.0))

    # Sequential with a non-fusable op in the middle (exercises flush logic).
    seq_mixed = Sequential(ReLU(), Zero(stride=2, C_in=C, C_out=C), ReLU())
    out4 = seq_mixed.forward(x, edge_data=None)
    jax.block_until_ready(out4)
    ref4 = jnp.maximum(jnp.maximum(x, 0.0)[:, :, ::2, ::2] * 0.0, 0.0)
    assert out4.shape == ref4.shape and jnp.array_equal(out4, ref4, equal_nan=True)
    assert len(seq_mixed.get_embedded_ops()) == 3

    # --- larger tensor: exercises the fused lane-dense Pallas path ---------- #
    # (8, 64, 32, 32) f32 = 2 MiB -> rows=512, cols=1024, tile=(256,1024), grid=(2,)
    xb = jax.random.normal(jax.random.PRNGKey(1), (8, 64, 32, 32),
                           dtype=jnp.float32)
    xb = xb.at[0, 0, 0, 0].set(jnp.nan)
    seq_fused = Sequential(ReLU(), Zero(stride=1, C_in=64, C_out=64))
    out5 = seq_fused.forward(xb, edge_data=None)        # ONE pallas_call (fused)
    jax.block_until_ready(out5)
    ref5 = jnp.maximum(xb, 0.0) * 0.0
    assert out5.shape == ref5.shape and out5.dtype == ref5.dtype
    assert jnp.array_equal(out5, ref5, equal_nan=True)
    assert len(seq_fused.get_embedded_ops()) == 2

    # Direct single-primitive Pallas path as well.
    out6 = ReLU()(xb)
    jax.block_until_ready(out6)
    assert jnp.array_equal(out6, jnp.maximum(xb, 0.0), equal_nan=True)

    print("KERNEL_OK")
</pallas_src>

<mosaic_0001>
module attributes {stable_mosaic.version = 11 : i64} {
  func.func @_elementwise_kernel(%arg0: i32, %arg1: memref<256x1024xf32, #tpu.memory_space<vmem>>, %arg2: memref<256x1024xf32, #tpu.memory_space<vmem>>) attributes {dimension_semantics = [#tpu.dimension_semantics<parallel>], iteration_bounds = array<i64: 2>, scalar_prefetch = 0 : i64, scratch_operands = 0 : i64, tpu.core_type = #tpu.core_type<tc>, window_params = [{transform_indices = @transform_0, window_bounds = array<i64: 256, 1024>}, {transform_indices = @transform_1, window_bounds = array<i64: 256, 1024>}]} {
    %c0 = arith.constant 0 : index
    %c0_0 = arith.constant 0 : index
    %0 = vector.load %arg1[%c0, %c0_0] : memref<256x1024xf32, #tpu.memory_space<vmem>>, vector<256x1024xf32>
    %cst = arith.constant 0.000000e+00 : f32
    %1 = vector.broadcast %cst : f32 to vector<256x1024xf32>
    %2 = arith.maximumf %0, %1 : vector<256x1024xf32>
    %cst_1 = arith.constant 0.000000e+00 : f32
    %3 = vector.broadcast %cst_1 : f32 to vector<256x1024xf32>
    %4 = arith.mulf %2, %3 : vector<256x1024xf32>
    %c0_2 = arith.constant 0 : index
    %c0_3 = arith.constant 0 : index
    %5 = vector.load %arg2[%c0_2, %c0_3] : memref<256x1024xf32, #tpu.memory_space<vmem>>, vector<256x1024xf32>
    tpu.vector_store %arg2[%c0_2, %c0_3], %4 {strides = array<i32>} : memref<256x1024xf32, #tpu.memory_space<vmem>>, vector<256x1024xf32>,
    return
  }
  func.func @transform_0(%arg0: i32) -> (i32, i32) {
    %c0_i32 = arith.constant 0 : i32
    %c0_i32_0 = arith.constant 0 : i32
    return %arg0, %c0_i32 : i32, i32
  }
  func.func @transform_1(%arg0: i32) -> (i32, i32) {
    %c0_i32 = arith.constant 0 : i32
    %c0_i32_0 = arith.constant 0 : i32
    return %arg0, %c0_i32 : i32, i32
  }
}

</mosaic_0001>

<bundles_post_ra>
// kernel: tpu_custom_call.1
= control target key start
LH: loop header
LB: loop body
LE: loop exit
PB: predicated region body
PF: predicated region fallthrough
CT: control target
= control target key end

     0   :  { %6 = vsyncpa [#allocation3], 0  ;;  %s2105_s0 = inlined_call_operand.hbm [shape: f32[512,1024], index: 0, kind: input, shape index: {}]   ;;  %s2106_s1 = inlined_call_operand.hbm [shape: f32[512,1024], index: 1, kind: output, shape index: {}]  }
   0x1   :  { %8 = vsyncpa [#allocation3 + $0x1], 0 }
   0x2   :  { %9 = vsyncpa [#allocation4], 0 }
   0x3   :  { %11 = vsyncpa [#allocation4 + $0x1], 0  ;;  %s1430_s6 = smov 0   ;;  %s1432_s7 = smov 0  }
   0x4   :  { %s1434_s8 = smov 0   ;;  %s1436_s9 = smov 0  }
   0x5 LB: > { %s1451_s10 = sadd.s32 4294967295, %s1412_s9   ;;  %s1250_s11 = sadd.s32 4294967294, %s1412_s9   ;;  %s1412_s9 = sphi %s1436_s9, %s2121_s9   ;;  %s1408_s8 = sphi %s1434_s8, %s2120_s8   ;;  %s1404_s7 = sphi %s1432_s7, %s2119_s7   ;;  %s1400_s6 = sphi %s1430_s6, %s2118_s6  }
   0x6   : > { %s1455_s12 = sadd.s32 1, %s1412_s9   ;;  %s24_s13 = sadd.s32 1, %s1408_s8 }
   0x7   : > { %s21_s14 = ssub.s32 %s1412_s9, %s1455_s12  ;;  %p31_p0 = scmp.ne.s32.totalorder %s1408_s8, %s1404_s7 }
   0x8   : > { %p22_p1 = scmp.eq.s32.totalorder %s21_s14, 0  ;;  %p32_p2 = scmp.eq.s32.totalorder %s1412_s9, 0 }
   0x9   : > { %p37_p3 = scmp.ne.s32.totalorder %s1404_s7, %s1400_s6  ;;  %p38_p4 = scmp.eq.s32.totalorder %s1451_s10, 0 }
   0xa   : > { %s1467_s15 = scalar_select %p22_p1, %s1408_s8, %s24_s13  }
   0xb   : > { %p1469_p5 = por %p32_p2, %p31_p0  ;;  %p1473_p6 = por %p38_p4, %p37_p3 }
   0xc   : > { %p61_p7 = scmp.eq.s32.totalorder %s1451_s10, 1  ;;  %p67_p8 = scmp.eq.s32.totalorder %s1250_s11, 1 }
   0xd   : > { %s2110_s17 = scalar_select %p1473_p6, 1, 0 }
   0xe   : > { %p1282_p10 = scmp.lt.s32.totalorder %s1412_s9, 2  ;;  %p1480_p11 = por %p61_p7, %p31_p0 }
   0xf   : > { %p1484_p12 = por %p67_p8, %p37_p3  ;;  %s87_s20 = sand.u32 1, %s1408_s8  }
  0x10   : > { %s2111_s18 = scalar_select %p1480_p11, 1, 0 }
  0x11   : > { %s2112_s19 = scalar_select %p1484_p12, 1, 0 }
  0x12   : > { %s1267_s21 = sshll.u32 %s1412_s9, 15  ;;  %s1253_s22 = sshll.u32 %s87_s20, 11 }
  0x13   : > { %s1493_s25 = scalar_lea.hbm %s2105_s0, %s1267_s21  ;;  %s91_s26 = scalar_lea.vmem [#allocation2], %s1253_s22 }
  0x14   : > { %s99_s27 = sshll.u32 %s91_s26, 4  ;;  %p1497_p13 = pnand %p1282_p10, %p1469_p5  ;;  %s1501_s27 = int_to_ptr.vmem [resolvable:$true] %s99_s27 }
  0x15   : > { %s1503_s29 = scalar_lea.sflag [#allocation3], %s87_s20  ;;  %s1320_s30 = scalar_lea.hbm %s1493_s25, 32768 }
  0x16   : > { %p1321_p0 = scmp.ne.s32.totalorder %s1493_s25, %s1320_s30  ;;  %p1322_p1 = pneg %p1497_p13 }
  0x17   : > { %s1325_s4 = scalar_lea.hbm %s2105_s0, 65536  ;;  %p1326_p4 = scmp.lt.s32.totalorder %s1493_s25, %s2105_s0 }
  0x18   : > { %p1323_p2 = pnand %p1322_p1, %p1321_p0  ;;  %p1327_p5 = scmp.lt.s32.totalorder %s1325_s4, %s1320_s30 }
  0x1a   : > { %p1324_p3 = pneg %p1323_p2  ;;  %p1328_p7 = por %p1327_p5, %p1326_p4 }
  0x1c   : > { %p1329_p8 = pnand %p1328_p7, %p1324_p3 }
  0x1e   : > { %1332 = shalt.err (!%p1329_p8)
}
  0x1f   : > { %s1333_s13 = scalar_lea.vmem %s1501_s27, 32768  ;;  %s1414_s14 = smov [#allocation2]  }
  0x20   : > { %p1334_p10 = scmp.ne.s32.totalorder %s1501_s27, %s1333_s13  ;;  %s1338_s16 = sshll.u32 %s1414_s14, 4  ;;  %s1339_s16 = int_to_ptr.vmem [resolvable:$false] %s1338_s16 }
  0x21   : > { %s1340_s20 = scalar_lea.vmem %s1339_s16, 65536  ;;  %p1341_p2 = scmp.lt.s32.totalorder %s1501_s27, %s1339_s16 }
  0x22   : > { %p1336_p9 = pnand %p1334_p10, %p1322_p1  ;;  %p1342_p12 = scmp.lt.s32.totalorder %s1340_s20, %s1333_s13 }
  0x24   : > { %p1337_p0 = pneg %p1336_p9  ;;  %p1343_p11 = por %p1342_p12, %p1341_p2 }
  0x26   : > { %p1344_p6 = pnand %p1343_p11, %p1337_p0 }
  0x28   : > { %1347 = shalt.err (!%p1344_p6)
}
  0x29   : > { %s1415_s21 = smov 1024   ;;  %s1416_s22 = smov 64  }
  0x2a   : > { %1277 = dma.hbm_to_vmem [thread:$0]  (!%p1497_p13), %s1493_s25, 32768, %s1501_s27, %s1503_s29, %s1415_s21, %s1415_s21, %s1416_s22  }
  0x2b   : > { %p1257_p9 = scmp.ge.s32.totalorder %s1412_s9, 1  ;;  %p107_p1 = scmp.lt.s32.totalorder %s1412_s9, 3 }
  0x2d   : > { %p108_p3 = pnand %p1257_p9, %p107_p1 }
  0x2e   : > { %s1527_s23 = sand.u32 (!%p108_p3), 1, %s1404_s7   ;;  %p2114_p6 = scmp.ne.s32.totalorder (!%p108_p3), %s2110_s17, 0 }
  0x2f   : > { %111 = sbr.rel (%p108_p3) target bundleno = 246 (0xf6), region = 24  ;;  %s1258_s24 = sshll.u32 (!%p108_p3), %s1527_s23, 11 }
  0x30   : > { %s114_s26 = scalar_lea.sflag (!%p108_p3), [#allocation3], %s1527_s23  ;;  %s1533_s30 = scalar_lea.vmem (!%p108_p3), [#allocation2], %s1258_s24 }
  0x34   : > { %1391 = dma.done.wait (%p2114_p6), %s114_s26, 32768  }
  0x35   : > { %1393 = vsyncadd (%p2114_p6), %s114_s26, 4294934528  ;;  %v138_v0 = vld [vmem:[%s1533_s30] sm:$0xff]  ;;  %v139_v1 = vld [vmem:[%s1533_s30 + $0x8] sm:$0xff]  ;;  %s1554_s17 = scalar_lea.vmem [#allocation5], %s1258_s24  ;;  %s1269_s25 = sshll.u32 %s1451_s10, 15 }
  0x36   : > { %v140_v2 = vld [vmem:[%s1533_s30 + $0x10] sm:$0xff]  ;;  %v394_v3 = vmax.f32 %v138_v0, 0.0  ;;  %v395_v4 = vmax.f32 %v139_v1, 0.0  ;;  %v141_v6 = vld [vmem:[%s1533_s30 + $0x18] sm:$0xff]  ;;  %v142_v7 = vld [vmem:[%s1533_s30 + $0x20] sm:$0xff]  ;;  %s1177_s27 = sshll.u32 %s1554_s17, 4  ;;  %s2055_s2 = scalar_lea.hbm %s2106_s1, %s1269_s25  ;;  %s2057_s27 = int_to_ptr.vmem [resolvable:$true] %s1177_s27 }
  0x37   : > { %v396_v5 = vmax.f32 %v140_v2, 0.0  ;;  %v143_v8 = vld [vmem:[%s1533_s30 + $0x28] sm:$0xff]  ;;  %v397_v9 = vmax.f32 %v141_v6, 0.0  ;;  %v398_v10 = vmax.f32 %v142_v7, 0.0  ;;  %v144_v12 = vld [vmem:[%s1533_s30 + $0x30] sm:$0xff]  ;;  %v145_v13 = vld [vmem:[%s1533_s30 + $0x38] sm:$0xff] }
  0x38   : > { %v399_v11 = vmax.f32 %v143_v8, 0.0  ;;  %v146_v14 = vld [vmem:[%s1533_s30 + $0x40] sm:$0xff]  ;;  %v650_v15 = vmul.f32 0.0, %v394_v3  ;;  %v651_v16 = vmul.f32 0.0, %v395_v4  ;;  %v400_v18 = vmax.f32 %v144_v12, 0.0  ;;  %v147_v19 = vld [vmem:[%s1533_s30 + $0x48] sm:$0xff] }
  0x39   : > { %v652_v17 = vmul.f32 0.0, %v396_v5  ;;  %v148_v20 = vld [vmem:[%s1533_s30 + $0x50] sm:$0xff]  ;;  %v653_v21 = vmul.f32 0.0, %v397_v9  ;;  %v654_v22 = vmul.f32 0.0, %v398_v10  ;;  %v401_v24 = vmax.f32 %v145_v13, 0.0  ;;  %v149_v25 = vld [vmem:[%s1533_s30 + $0x58] sm:$0xff] }
  0x3a   : > { %v655_v23 = vmul.f32 0.0, %v399_v11  ;;  %v150_v26 = vld [vmem:[%s1533_s30 + $0x60] sm:$0xff]  ;;  %906 = vst [vmem:[%s1554_s17] sm:$0xff] %v650_v15  ;;  %907 = vst [vmem:[%s1554_s17 + $0x8] sm:$0xff] %v651_v16  ;;  %v656_v27 = vmul.f32 0.0, %v400_v18  ;;  %v402_v28 = vmax.f32 %v146_v14, 0.0  ;;  %v403_v29 = vmax.f32 %v147_v19, 0.0 }
  0x3b   : > { %908 = vst [vmem:[%s1554_s17 + $0x10] sm:$0xff] %v652_v17  ;;  %v404_v30 = vmax.f32 %v148_v20, 0.0  ;;  %v151_v31 = vld [vmem:[%s1533_s30 + $0x68] sm:$0xff]  ;;  %v152_v32 = vld [vmem:[%s1533_s30 + $0x70] sm:$0xff]  ;;  %909 = vst [vmem:[%s1554_s17 + $0x18] sm:$0xff] %v653_v21  ;;  %v657_v33 = vmul.f32 0.0, %v401_v24 }
  0x3c   : > { %910 = vst [vmem:[%s1554_s17 + $0x20] sm:$0xff] %v654_v22  ;;  %911 = vst [vmem:[%s1554_s17 + $0x28] sm:$0xff] %v655_v23  ;;  %v405_v34 = vmax.f32 %v149_v25, 0.0  ;;  %v406_v35 = vmax.f32 %v150_v26, 0.0  ;;  %v407_v36 = vmax.f32 %v151_v31, 0.0  ;;  %v153_v37 = vld [vmem:[%s1533_s30 + $0x78] sm:$0xff] }
  0x3d   : > { %v154_v38 = vld [vmem:[%s1533_s30 + $0x80] sm:$0xff]  ;;  %912 = vst [vmem:[%s1554_s17 + $0x30] sm:$0xff] %v656_v27  ;;  %v658_v39 = vmul.f32 0.0, %v402_v28  ;;  %v659_v40 = vmul.f32 0.0, %v403_v29  ;;  %v660_v41 = vmul.f32 0.0, %v404_v30  ;;  %v408_v42 = vmax.f32 %v152_v32, 0.0 }
  0x3e   : > { %v155_v43 = vld [vmem:[%s1533_s30 + $0x88] sm:$0xff]  ;;  %v156_v44 = vld [vmem:[%s1533_s30 + $0x90] sm:$0xff]  ;;  %913 = vst [vmem:[%s1554_s17 + $0x38] sm:$0xff] %v657_v33  ;;  %v661_v45 = vmul.f32 0.0, %v405_v34  ;;  %v662_v46 = vmul.f32 0.0, %v406_v35  ;;  %v663_v47 = vmul.f32 0.0, %v407_v36 }
  0x3f   : > { %v409_v48 = vmax.f32 %v153_v37, 0.0  ;;  %v157_v49 = vld [vmem:[%s1533_s30 + $0x98] sm:$0xff]  ;;  %v158_v50 = vld [vmem:[%s1533_s30 + $0xa0] sm:$0xff]  ;;  %914 = vst [vmem:[%s1554_s17 + $0x40] sm:$0xff] %v658_v39  ;;  %915 = vst [vmem:[%s1554_s17 + $0x48] sm:$0xff] %v659_v40  ;;  %v664_v51 = vmul.f32 0.0, %v408_v42 }
  0x40   : > { %916 = vst [vmem:[%s1554_s17 + $0x50] sm:$0xff] %v660_v41  ;;  %v410_v52 = vmax.f32 %v154_v38, 0.0  ;;  %v411_v53 = vmax.f32 %v155_v43, 0.0  ;;  %v412_v54 = vmax.f32 %v156_v44, 0.0  ;;  %v159_v55 = vld [vmem:[%s1533_s30 + $0xa8] sm:$0xff]  ;;  %v160_v56 = vld [vmem:[%s1533_s30 + $0xb0] sm:$0xff] }
  0x41   : > { %917 = vst [vmem:[%s1554_s17 + $0x58] sm:$0xff] %v661_v45  ;;  %918 = vst [vmem:[%s1554_s17 + $0x60] sm:$0xff] %v662_v46  ;;  %v665_v57 = vmul.f32 0.0, %v409_v48  ;;  %v413_v58 = vmax.f32 %v157_v49, 0.0  ;;  %v414_v59 = vmax.f32 %v158_v50, 0.0  ;;  %v415_v60 = vmax.f32 %v159_v55, 0.0 }
  0x42   : > { %919 = vst [vmem:[%s1554_s17 + $0x68] sm:$0xff] %v663_v47  ;;  %v161_v61 = vld [vmem:[%s1533_s30 + $0xb8] sm:$0xff]  ;;  %v162_v62 = vld [vmem:[%s1533_s30 + $0xc0] sm:$0xff]  ;;  %920 = vst [vmem:[%s1554_s17 + $0x70] sm:$0xff] %v664_v51  ;;  %v666_v63 = vmul.f32 0.0, %v410_v52  ;;  %v667_v0 = vmul.f32 0.0, %v411_v53 }
  0x43   : > { %v668_v1 = vmul.f32 0.0, %v412_v54  ;;  %v416_v2 = vmax.f32 %v160_v56, 0.0  ;;  %v163_v3 = vld [vmem:[%s1533_s30 + $0xc8] sm:$0xff]  ;;  %v164_v4 = vld [vmem:[%s1533_s30 + $0xd0] sm:$0xff]  ;;  %921 = vst [vmem:[%s1554_s17 + $0x78] sm:$0xff] %v665_v57  ;;  %v669_v5 = vmul.f32 0.0, %v413_v58 }
  0x44   : > { %v670_v6 = vmul.f32 0.0, %v414_v59  ;;  %v671_v7 = vmul.f32 0.0, %v415_v60  ;;  %v417_v8 = vmax.f32 %v161_v61, 0.0  ;;  %v165_v9 = vld [vmem:[%s1533_s30 + $0xd8] sm:$0xff]  ;;  %v166_v10 = vld [vmem:[%s1533_s30 + $0xe0] sm:$0xff]  ;;  %922 = vst [vmem:[%s1554_s17 + $0x80] sm:$0xff] %v666_v63 }
  0x45   : > { %923 = vst [vmem:[%s1554_s17 + $0x88] sm:$0xff] %v667_v0  ;;  %924 = vst [vmem:[%s1554_s17 + $0x90] sm:$0xff] %v668_v1  ;;  %v672_v11 = vmul.f32 0.0, %v416_v2  ;;  %v418_v12 = vmax.f32 %v162_v62, 0.0  ;;  %v419_v13 = vmax.f32 %v163_v3, 0.0  ;;  %v420_v14 = vmax.f32 %v164_v4, 0.0 }
  0x46   : > { %v167_v15 = vld [vmem:[%s1533_s30 + $0xe8] sm:$0xff]  ;;  %v168_v16 = vld [vmem:[%s1533_s30 + $0xf0] sm:$0xff]  ;;  %925 = vst [vmem:[%s1554_s17 + $0x98] sm:$0xff] %v669_v5  ;;  %926 = vst [vmem:[%s1554_s17 + $0xa0] sm:$0xff] %v670_v6  ;;  %v673_v17 = vmul.f32 0.0, %v417_v8  ;;  %v421_v18 = vmax.f32 %v165_v9, 0.0 }
  0x47   : > { %927 = vst [vmem:[%s1554_s17 + $0xa8] sm:$0xff] %v671_v7  ;;  %v422_v19 = vmax.f32 %v166_v10, 0.0  ;;  %v423_v20 = vmax.f32 %v167_v15, 0.0  ;;  %v169_v21 = vld [vmem:[%s1533_s30 + $0xf8] sm:$0xff]  ;;  %v170_v22 = vld [vmem:[%s1533_s30 + $0x100] sm:$0xff]  ;;  %928 = vst [vmem:[%s1554_s17 + $0xb0] sm:$0xff] %v672_v11 }
  0x48   : > { %v674_v23 = vmul.f32 0.0, %v418_v12  ;;  %v675_v24 = vmul.f32 0.0, %v419_v13  ;;  %v676_v25 = vmul.f32 0.0, %v420_v14  ;;  %v424_v26 = vmax.f32 %v168_v16, 0.0  ;;  %v171_v27 = vld [vmem:[%s1533_s30 + $0x108] sm:$0xff]  ;;  %v172_v28 = vld [vmem:[%s1533_s30 + $0x110] sm:$0xff] }
  0x49   : > { %929 = vst [vmem:[%s1554_s17 + $0xb8] sm:$0xff] %v673_v17  ;;  %v677_v29 = vmul.f32 0.0, %v421_v18  ;;  %v678_v30 = vmul.f32 0.0, %v422_v19  ;;  %v679_v31 = vmul.f32 0.0, %v423_v20  ;;  %v425_v32 = vmax.f32 %v169_v21, 0.0  ;;  %v173_v33 = vld [vmem:[%s1533_s30 + $0x118] sm:$0xff] }
  0x4a   : > { %v174_v34 = vld [vmem:[%s1533_s30 + $0x120] sm:$0xff]  ;;  %930 = vst [vmem:[%s1554_s17 + $0xc0] sm:$0xff] %v674_v23  ;;  %931 = vst [vmem:[%s1554_s17 + $0xc8] sm:$0xff] %v675_v24  ;;  %v680_v35 = vmul.f32 0.0, %v424_v26  ;;  %v426_v36 = vmax.f32 %v170_v22, 0.0  ;;  %v427_v37 = vmax.f32 %v171_v27, 0.0 }
  0x4b   : > { %932 = vst [vmem:[%s1554_s17 + $0xd0] sm:$0xff] %v676_v25  ;;  %v428_v38 = vmax.f32 %v172_v28, 0.0  ;;  %v175_v39 = vld [vmem:[%s1533_s30 + $0x128] sm:$0xff]  ;;  %v176_v40 = vld [vmem:[%s1533_s30 + $0x130] sm:$0xff]  ;;  %933 = vst [vmem:[%s1554_s17 + $0xd8] sm:$0xff] %v677_v29  ;;  %v681_v41 = vmul.f32 0.0, %v425_v32 }
  0x4c   : > { %934 = vst [vmem:[%s1554_s17 + $0xe0] sm:$0xff] %v678_v30  ;;  %935 = vst [vmem:[%s1554_s17 + $0xe8] sm:$0xff] %v679_v31  ;;  %v429_v42 = vmax.f32 %v173_v33, 0.0  ;;  %v430_v43 = vmax.f32 %v174_v34, 0.0  ;;  %v431_v44 = vmax.f32 %v175_v39, 0.0  ;;  %v177_v45 = vld [vmem:[%s1533_s30 + $0x138] sm:$0xff] }
  0x4d   : > { %v178_v46 = vld [vmem:[%s1533_s30 + $0x140] sm:$0xff]  ;;  %936 = vst [vmem:[%s1554_s17 + $0xf0] sm:$0xff] %v680_v35  ;;  %v682_v47 = vmul.f32 0.0, %v426_v36  ;;  %v683_v48 = vmul.f32 0.0, %v427_v37  ;;  %v684_v49 = vmul.f32 0.0, %v428_v38  ;;  %v432_v50 = vmax.f32 %v176_v40, 0.0 }
  0x4e   : > { %v179_v51 = vld [vmem:[%s1533_s30 + $0x148] sm:$0xff]  ;;  %v180_v52 = vld [vmem:[%s1533_s30 + $0x150] sm:$0xff]  ;;  %937 = vst [vmem:[%s1554_s17 + $0xf8] sm:$0xff] %v681_v41  ;;  %v685_v53 = vmul.f32 0.0, %v429_v42  ;;  %v686_v54 = vmul.f32 0.0, %v430_v43  ;;  %v687_v55 = vmul.f32 0.0, %v431_v44 }
  0x4f   : > { %v433_v56 = vmax.f32 %v177_v45, 0.0  ;;  %v181_v57 = vld [vmem:[%s1533_s30 + $0x158] sm:$0xff]  ;;  %v182_v58 = vld [vmem:[%s1533_s30 + $0x160] sm:$0xff]  ;;  %938 = vst [vmem:[%s1554_s17 + $0x100] sm:$0xff] %v682_v47  ;;  %939 = vst [vmem:[%s1554_s17 + $0x108] sm:$0xff] %v683_v48  ;;  %v688_v59 = vmul.f32 0.0, %v432_v50 }
  0x50   : > { %940 = vst [vmem:[%s1554_s17 + $0x110] sm:$0xff] %v684_v49  ;;  %v434_v60 = vmax.f32 %v178_v46, 0.0  ;;  %v435_v61 = vmax.f32 %v179_v51, 0.0  ;;  %v436_v62 = vmax.f32 %v180_v52, 0.0  ;;  %v183_v63 = vld [vmem:[%s1533_s30 + $0x168] sm:$0xff]  ;;  %v184_v0 = vld [vmem:[%s1533_s30 + $0x170] sm:$0xff] }
  0x51   : > { %941 = vst [vmem:[%s1554_s17 + $0x118] sm:$0xff] %v685_v53  ;;  %942 = vst [vmem:[%s1554_s17 + $0x120] sm:$0xff] %v686_v54  ;;  %v689_v1 = vmul.f32 0.0, %v433_v56  ;;  %v437_v2 = vmax.f32 %v181_v57, 0.0  ;;  %v438_v3 = vmax.f32 %v182_v58, 0.0  ;;  %v439_v4 = vmax.f32 %v183_v63, 0.0 }
  0x52   : > { %943 = vst [vmem:[%s1554_s17 + $0x128] sm:$0xff] %v687_v55  ;;  %v185_v5 = vld [vmem:[%s1533_s30 + $0x178] sm:$0xff]  ;;  %v186_v6 = vld [vmem:[%s1533_s30 + $0x180] sm:$0xff]  ;;  %944 = vst [vmem:[%s1554_s17 + $0x130] sm:$0xff] %v688_v59  ;;  %v690_v7 = vmul.f32 0.0, %v434_v60  ;;  %v691_v8 = vmul.f32 0.0, %v435_v61 }
  0x53   : > { %v692_v9 = vmul.f32 0.0, %v436_v62  ;;  %v440_v10 = vmax.f32 %v184_v0, 0.0  ;;  %v187_v11 = vld [vmem:[%s1533_s30 + $0x188] sm:$0xff]  ;;  %v188_v12 = vld [vmem:[%s1533_s30 + $0x190] sm:$0xff]  ;;  %945 = vst [vmem:[%s1554_s17 + $0x138] sm:$0xff] %v689_v1  ;;  %v693_v13 = vmul.f32 0.0, %v437_v2 }
  0x54   : > { %v694_v14 = vmul.f32 0.0, %v438_v3  ;;  %v695_v15 = vmul.f32 0.0, %v439_v4  ;;  %v441_v16 = vmax.f32 %v185_v5, 0.0  ;;  %v189_v17 = vld [vmem:[%s1533_s30 + $0x198] sm:$0xff]  ;;  %v190_v18 = vld [vmem:[%s1533_s30 + $0x1a0] sm:$0xff]  ;;  %946 = vst [vmem:[%s1554_s17 + $0x140] sm:$0xff] %v690_v7 }
  0x55   : > { %947 = vst [vmem:[%s1554_s17 + $0x148] sm:$0xff] %v691_v8  ;;  %948 = vst [vmem:[%s1554_s17 + $0x150] sm:$0xff] %v692_v9  ;;  %v696_v19 = vmul.f32 0.0, %v440_v10  ;;  %v442_v20 = vmax.f32 %v186_v6, 0.0  ;;  %v443_v21 = vmax.f32 %v187_v11, 0.0  ;;  %v444_v22 = vmax.f32 %v188_v12, 0.0 }
  0x56   : > { %v191_v23 = vld [vmem:[%s1533_s30 + $0x1a8] sm:$0xff]  ;;  %v192_v24 = vld [vmem:[%s1533_s30 + $0x1b0] sm:$0xff]  ;;  %949 = vst [vmem:[%s1554_s17 + $0x158] sm:$0xff] %v693_v13  ;;  %950 = vst [vmem:[%s1554_s17 + $0x160] sm:$0xff] %v694_v14  ;;  %v697_v25 = vmul.f32 0.0, %v441_v16  ;;  %v445_v26 = vmax.f32 %v189_v17, 0.0 }
  0x57   : > { %951 = vst [vmem:[%s1554_s17 + $0x168] sm:$0xff] %v695_v15  ;;  %v446_v27 = vmax.f32 %v190_v18, 0.0  ;;  %v447_v28 = vmax.f32 %v191_v23, 0.0  ;;  %v193_v29 = vld [vmem:[%s1533_s30 + $0x1b8] sm:$0xff]  ;;  %v194_v30 = vld [vmem:[%s1533_s30 + $0x1c0] sm:$0xff]  ;;  %952 = vst [vmem:[%s1554_s17 + $0x170] sm:$0xff] %v696_v19 }
  0x58   : > { %v698_v31 = vmul.f32 0.0, %v442_v20  ;;  %v699_v32 = vmul.f32 0.0, %v443_v21  ;;  %v700_v33 = vmul.f32 0.0, %v444_v22  ;;  %v448_v34 = vmax.f32 %v192_v24, 0.0  ;;  %v195_v35 = vld [vmem:[%s1533_s30 + $0x1c8] sm:$0xff]  ;;  %v196_v36 = vld [vmem:[%s1533_s30 + $0x1d0] sm:$0xff] }
  0x59   : > { %953 = vst [vmem:[%s1554_s17 + $0x178] sm:$0xff] %v697_v25  ;;  %v701_v37 = vmul.f32 0.0, %v445_v26  ;;  %v702_v38 = vmul.f32 0.0, %v446_v27  ;;  %v703_v39 = vmul.f32 0.0, %v447_v28  ;;  %v449_v40 = vmax.f32 %v193_v29, 0.0  ;;  %v197_v41 = vld [vmem:[%s1533_s30 + $0x1d8] sm:$0xff] }
  0x5a   : > { %v198_v42 = vld [vmem:[%s1533_s30 + $0x1e0] sm:$0xff]  ;;  %954 = vst [vmem:[%s1554_s17 + $0x180] sm:$0xff] %v698_v31  ;;  %955 = vst [vmem:[%s1554_s17 + $0x188] sm:$0xff] %v699_v32  ;;  %v704_v43 = vmul.f32 0.0, %v448_v34  ;;  %v450_v44 = vmax.f32 %v194_v30, 0.0  ;;  %v451_v45 = vmax.f32 %v195_v35, 0.0 }
  0x5b   : > { %956 = vst [vmem:[%s1554_s17 + $0x190] sm:$0xff] %v700_v33  ;;  %v452_v46 = vmax.f32 %v196_v36, 0.0  ;;  %v199_v47 = vld [vmem:[%s1533_s30 + $0x1e8] sm:$0xff]  ;;  %v200_v48 = vld [vmem:[%s1533_s30 + $0x1f0] sm:$0xff]  ;;  %957 = vst [vmem:[%s1554_s17 + $0x198] sm:$0xff] %v701_v37  ;;  %v705_v49 = vmul.f32 0.0, %v449_v40 }
  0x5c   : > { %958 = vst [vmem:[%s1554_s17 + $0x1a0] sm:$0xff] %v702_v38  ;;  %959 = vst [vmem:[%s1554_s17 + $0x1a8] sm:$0xff] %v703_v39  ;;  %v453_v50 = vmax.f32 %v197_v41, 0.0  ;;  %v454_v51 = vmax.f32 %v198_v42, 0.0  ;;  %v455_v52 = vmax.f32 %v199_v47, 0.0  ;;  %v201_v53 = vld [vmem:[%s1533_s30 + $0x1f8] sm:$0xff] }
  0x5d   : > { %v202_v54 = vld [vmem:[%s1533_s30 + $0x200] sm:$0xff]  ;;  %960 = vst [vmem:[%s1554_s17 + $0x1b0] sm:$0xff] %v704_v43  ;;  %v706_v55 = vmul.f32 0.0, %v450_v44  ;;  %v707_v56 = vmul.f32 0.0, %v451_v45  ;;  %v708_v57 = vmul.f32 0.0, %v452_v46  ;;  %v456_v58 = vmax.f32 %v200_v48, 0.0 }
  0x5e   : > { %v203_v59 = vld [vmem:[%s1533_s30 + $0x208] sm:$0xff]  ;;  %v204_v60 = vld [vmem:[%s1533_s30 + $0x210] sm:$0xff]  ;;  %961 = vst [vmem:[%s1554_s17 + $0x1b8] sm:$0xff] %v705_v49  ;;  %v709_v61 = vmul.f32 0.0, %v453_v50  ;;  %v710_v62 = vmul.f32 0.0, %v454_v51  ;;  %v711_v63 = vmul.f32 0.0, %v455_v52 }
  0x5f   : > { %v457_v0 = vmax.f32 %v201_v53, 0.0  ;;  %v205_v1 = vld [vmem:[%s1533_s30 + $0x218] sm:$0xff]  ;;  %v206_v2 = vld [vmem:[%s1533_s30 + $0x220] sm:$0xff]  ;;  %962 = vst [vmem:[%s1554_s17 + $0x1c0] sm:$0xff] %v706_v55  ;;  %963 = vst [vmem:[%s1554_s17 + $0x1c8] sm:$0xff] %v707_v56  ;;  %v712_v3 = vmul.f32 0.0, %v456_v58 }
  0x60   : > { %964 = vst [vmem:[%s1554_s17 + $0x1d0] sm:$0xff] %v708_v57  ;;  %v458_v4 = vmax.f32 %v202_v54, 0.0  ;;  %v459_v5 = vmax.f32 %v203_v59, 0.0  ;;  %v460_v6 = vmax.f32 %v204_v60, 0.0  ;;  %v207_v7 = vld [vmem:[%s1533_s30 + $0x228] sm:$0xff]  ;;  %v208_v8 = vld [vmem:[%s1533_s30 + $0x230] sm:$0xff] }
  0x61   : > { %965 = vst [vmem:[%s1554_s17 + $0x1d8] sm:$0xff] %v709_v61  ;;  %966 = vst [vmem:[%s1554_s17 + $0x1e0] sm:$0xff] %v710_v62  ;;  %v713_v9 = vmul.f32 0.0, %v457_v0  ;;  %v461_v10 = vmax.f32 %v205_v1, 0.0  ;;  %v462_v11 = vmax.f32 %v206_v2, 0.0  ;;  %v463_v12 = vmax.f32 %v207_v7, 0.0 }
  0x62   : > { %967 = vst [vmem:[%s1554_s17 + $0x1e8] sm:$0xff] %v711_v63  ;;  %v209_v13 = vld [vmem:[%s1533_s30 + $0x238] sm:$0xff]  ;;  %v210_v14 = vld [vmem:[%s1533_s30 + $0x240] sm:$0xff]  ;;  %968 = vst [vmem:[%s1554_s17 + $0x1f0] sm:$0xff] %v712_v3  ;;  %v714_v15 = vmul.f32 0.0, %v458_v4  ;;  %v715_v16 = vmul.f32 0.0, %v459_v5 }
  0x63   : > { %v716_v17 = vmul.f32 0.0, %v460_v6  ;;  %v464_v18 = vmax.f32 %v208_v8, 0.0  ;;  %v211_v19 = vld [vmem:[%s1533_s30 + $0x248] sm:$0xff]  ;;  %v212_v20 = vld [vmem:[%s1533_s30 + $0x250] sm:$0xff]  ;;  %969 = vst [vmem:[%s1554_s17 + $0x1f8] sm:$0xff] %v713_v9  ;;  %v717_v21 = vmul.f32 0.0, %v461_v10 }
  0x64   : > { %v718_v22 = vmul.f32 0.0, %v462_v11  ;;  %v719_v23 = vmul.f32 0.0, %v463_v12  ;;  %v465_v24 = vmax.f32 %v209_v13, 0.0  ;;  %v213_v25 = vld [vmem:[%s1533_s30 + $0x258] sm:$0xff]  ;;  %v214_v26 = vld [vmem:[%s1533_s30 + $0x260] sm:$0xff]  ;;  %970 = vst [vmem:[%s1554_s17 + $0x200] sm:$0xff] %v714_v15 }
  0x65   : > { %971 = vst [vmem:[%s1554_s17 + $0x208] sm:$0xff] %v715_v16  ;;  %972 = vst [vmem:[%s1554_s17 + $0x210] sm:$0xff] %v716_v17  ;;  %v720_v27 = vmul.f32 0.0, %v464_v18  ;;  %v466_v28 = vmax.f32 %v210_v14, 0.0  ;;  %v467_v29 = vmax.f32 %v211_v19, 0.0  ;;  %v468_v30 = vmax.f32 %v212_v20, 0.0 }
  0x66   : > { %v215_v31 = vld [vmem:[%s1533_s30 + $0x268] sm:$0xff]  ;;  %v216_v32 = vld [vmem:[%s1533_s30 + $0x270] sm:$0xff]  ;;  %973 = vst [vmem:[%s1554_s17 + $0x218] sm:$0xff] %v717_v21  ;;  %974 = vst [vmem:[%s1554_s17 + $0x220] sm:$0xff] %v718_v22  ;;  %v721_v33 = vmul.f32 0.0, %v465_v24  ;;  %v469_v34 = vmax.f32 %v213_v25, 0.0 }
  0x67   : > { %975 = vst [vmem:[%s1554_s17 + $0x228] sm:$0xff] %v719_v23  ;;  %v470_v35 = vmax.f32 %v214_v26, 0.0  ;;  %v471_v36 = vmax.f32 %v215_v31, 0.0  ;;  %v217_v37 = vld [vmem:[%s1533_s30 + $0x278] sm:$0xff]  ;;  %v218_v38 = vld [vmem:[%s1533_s30 + $0x280] sm:$0xff]  ;;  %976 = vst [vmem:[%s1554_s17 + $0x230] sm:$0xff] %v720_v27 }
  0x68   : > { %v722_v39 = vmul.f32 0.0, %v466_v28  ;;  %v723_v40 = vmul.f32 0.0, %v467_v29  ;;  %v724_v41 = vmul.f32 0.0, %v468_v30  ;;  %v472_v42 = vmax.f32 %v216_v32, 0.0  ;;  %v219_v43 = vld [vmem:[%s1533_s30 + $0x288] sm:$0xff]  ;;  %v220_v44 = vld [vmem:[%s1533_s30 + $0x290] sm:$0xff] }
  0x69   : > { %977 = vst [vmem:[%s1554_s17 + $0x238] sm:$0xff] %v721_v33  ;;  %v725_v45 = vmul.f32 0.0, %v469_v34  ;;  %v726_v46 = vmul.f32 0.0, %v470_v35  ;;  %v727_v47 = vmul.f32 0.0, %v471_v36  ;;  %v473_v48 = vmax.f32 %v217_v37, 0.0  ;;  %v221_v49 = vld [vmem:[%s1533_s30 + $0x298] sm:$0xff] }
  0x6a   : > { %v222_v50 = vld [vmem:[%s1533_s30 + $0x2a0] sm:$0xff]  ;;  %978 = vst [vmem:[%s1554_s17 + $0x240] sm:$0xff] %v722_v39  ;;  %979 = vst [vmem:[%s1554_s17 + $0x248] sm:$0xff] %v723_v40  ;;  %v728_v51 = vmul.f32 0.0, %v472_v42  ;;  %v474_v52 = vmax.f32 %v218_v38, 0.0  ;;  %v475_v53 = vmax.f32 %v219_v43, 0.0 }
  0x6b   : > { %980 = vst [vmem:[%s1554_s17 + $0x250] sm:$0xff] %v724_v41  ;;  %v476_v54 = vmax.f32 %v220_v44, 0.0  ;;  %v223_v55 = vld [vmem:[%s1533_s30 + $0x2a8] sm:$0xff]  ;;  %v224_v56 = vld [vmem:[%s1533_s30 + $0x2b0] sm:$0xff]  ;;  %981 = vst [vmem:[%s1554_s17 + $0x258] sm:$0xff] %v725_v45  ;;  %v729_v57 = vmul.f32 0.0, %v473_v48 }
  0x6c   : > { %982 = vst [vmem:[%s1554_s17 + $0x260] sm:$0xff] %v726_v46  ;;  %983 = vst [vmem:[%s1554_s17 + $0x268] sm:$0xff] %v727_v47  ;;  %v477_v58 = vmax.f32 %v221_v49, 0.0  ;;  %v478_v59 = vmax.f32 %v222_v50, 0.0  ;;  %v479_v60 = vmax.f32 %v223_v55, 0.0  ;;  %v225_v61 = vld [vmem:[%s1533_s30 + $0x2b8] sm:$0xff] }
  0x6d   : > { %v226_v62 = vld [vmem:[%s1533_s30 + $0x2c0] sm:$0xff]  ;;  %984 = vst [vmem:[%s1554_s17 + $0x270] sm:$0xff] %v728_v51  ;;  %v730_v63 = vmul.f32 0.0, %v474_v52  ;;  %v731_v0 = vmul.f32 0.0, %v475_v53  ;;  %v732_v1 = vmul.f32 0.0, %v476_v54  ;;  %v480_v2 = vmax.f32 %v224_v56, 0.0 }
  0x6e   : > { %v227_v3 = vld [vmem:[%s1533_s30 + $0x2c8] sm:$0xff]  ;;  %v228_v4 = vld [vmem:[%s1533_s30 + $0x2d0] sm:$0xff]  ;;  %985 = vst [vmem:[%s1554_s17 + $0x278] sm:$0xff] %v729_v57  ;;  %v733_v5 = vmul.f32 0.0, %v477_v58  ;;  %v734_v6 = vmul.f32 0.0, %v478_v59  ;;  %v735_v7 = vmul.f32 0.0, %v479_v60 }
  0x6f   : > { %v481_v8 = vmax.f32 %v225_v61, 0.0  ;;  %v229_v9 = vld [vmem:[%s1533_s30 + $0x2d8] sm:$0xff]  ;;  %v230_v10 = vld [vmem:[%s1533_s30 + $0x2e0] sm:$0xff]  ;;  %986 = vst [vmem:[%s1554_s17 + $0x280] sm:$0xff] %v730_v63  ;;  %987 = vst [vmem:[%s1554_s17 + $0x288] sm:$0xff] %v731_v0  ;;  %v736_v11 = vmul.f32 0.0, %v480_v2 }
  0x70   : > { %988 = vst [vmem:[%s1554_s17 + $0x290] sm:$0xff] %v732_v1  ;;  %v482_v12 = vmax.f32 %v226_v62, 0.0  ;;  %v483_v13 = vmax.f32 %v227_v3, 0.0  ;;  %v484_v14 = vmax.f32 %v228_v4, 0.0  ;;  %v231_v15 = vld [vmem:[%s1533_s30 + $0x2e8] sm:$0xff]  ;;  %v232_v16 = vld [vmem:[%s1533_s30 + $0x2f0] sm:$0xff] }
  0x71   : > { %989 = vst [vmem:[%s1554_s17 + $0x298] sm:$0xff] %v733_v5  ;;  %990 = vst [vmem:[%s1554_s17 + $0x2a0] sm:$0xff] %v734_v6  ;;  %v737_v17 = vmul.f32 0.0, %v481_v8  ;;  %v485_v18 = vmax.f32 %v229_v9, 0.0  ;;  %v486_v19 = vmax.f32 %v230_v10, 0.0  ;;  %v487_v20 = vmax.f32 %v231_v15, 0.0 }
  0x72   : > { %991 = vst [vmem:[%s1554_s17 + $0x2a8] sm:$0xff] %v735_v7  ;;  %v233_v21 = vld [vmem:[%s1533_s30 + $0x2f8] sm:$0xff]  ;;  %v234_v22 = vld [vmem:[%s1533_s30 + $0x300] sm:$0xff]  ;;  %992 = vst [vmem:[%s1554_s17 + $0x2b0] sm:$0xff] %v736_v11  ;;  %v738_v23 = vmul.f32 0.0, %v482_v12  ;;  %v739_v24 = vmul.f32 0.0, %v483_v13 }
  0x73   : > { %v740_v25 = vmul.f32 0.0, %v484_v14  ;;  %v488_v26 = vmax.f32 %v232_v16, 0.0  ;;  %v235_v27 = vld [vmem:[%s1533_s30 + $0x308] sm:$0xff]  ;;  %v236_v28 = vld [vmem:[%s1533_s30 + $0x310] sm:$0xff]  ;;  %993 = vst [vmem:[%s1554_s17 + $0x2b8] sm:$0xff] %v737_v17  ;;  %v741_v29 = vmul.f32 0.0, %v485_v18 }
  0x74   : > { %v742_v30 = vmul.f32 0.0, %v486_v19  ;;  %v743_v31 = vmul.f32 0.0, %v487_v20  ;;  %v489_v32 = vmax.f32 %v233_v21, 0.0  ;;  %v237_v33 = vld [vmem:[%s1533_s30 + $0x318] sm:$0xff]  ;;  %v238_v34 = vld [vmem:[%s1533_s30 + $0x320] sm:$0xff]  ;;  %994 = vst [vmem:[%s1554_s17 + $0x2c0] sm:$0xff] %v738_v23 }
  0x75   : > { %995 = vst [vmem:[%s1554_s17 + $0x2c8] sm:$0xff] %v739_v24  ;;  %996 = vst [vmem:[%s1554_s17 + $0x2d0] sm:$0xff] %v740_v25  ;;  %v744_v35 = vmul.f32 0.0, %v488_v26  ;;  %v490_v36 = vmax.f32 %v234_v22, 0.0  ;;  %v491_v37 = vmax.f32 %v235_v27, 0.0  ;;  %v492_v38 = vmax.f32 %v236_v28, 0.0 }
  0x76   : > { %v239_v39 = vld [vmem:[%s1533_s30 + $0x328] sm:$0xff]  ;;  %v240_v40 = vld [vmem:[%s1533_s30 + $0x330] sm:$0xff]  ;;  %997 = vst [vmem:[%s1554_s17 + $0x2d8] sm:$0xff] %v741_v29  ;;  %998 = vst [vmem:[%s1554_s17 + $0x2e0] sm:$0xff] %v742_v30  ;;  %v745_v41 = vmul.f32 0.0, %v489_v32  ;;  %v493_v42 = vmax.f32 %v237_v33, 0.0 }
  0x77   : > { %999 = vst [vmem:[%s1554_s17 + $0x2e8] sm:$0xff] %v743_v31  ;;  %v494_v43 = vmax.f32 %v238_v34, 0.0  ;;  %v495_v44 = vmax.f32 %v239_v39, 0.0  ;;  %v241_v45 = vld [vmem:[%s1533_s30 + $0x338] sm:$0xff]  ;;  %v242_v46 = vld [vmem:[%s1533_s30 + $0x340] sm:$0xff]  ;;  %1000 = vst [vmem:[%s1554_s17 + $0x2f0] sm:$0xff] %v744_v35 }
  0x78   : > { %v746_v47 = vmul.f32 0.0, %v490_v36  ;;  %v747_v48 = vmul.f32 0.0, %v491_v37  ;;  %v748_v49 = vmul.f32 0.0, %v492_v38  ;;  %v496_v50 = vmax.f32 %v240_v40, 0.0  ;;  %v243_v51 = vld [vmem:[%s1533_s30 + $0x348] sm:$0xff]  ;;  %v244_v52 = vld [vmem:[%s1533_s30 + $0x350] sm:$0xff] }
  0x79   : > { %1001 = vst [vmem:[%s1554_s17 + $0x2f8] sm:$0xff] %v745_v41  ;;  %v749_v53 = vmul.f32 0.0, %v493_v42  ;;  %v750_v54 = vmul.f32 0.0, %v494_v43  ;;  %v751_v55 = vmul.f32 0.0, %v495_v44  ;;  %v497_v56 = vmax.f32 %v241_v45, 0.0  ;;  %v245_v57 = vld [vmem:[%s1533_s30 + $0x358] sm:$0xff] }
  0x7a   : > { %v246_v58 = vld [vmem:[%s1533_s30 + $0x360] sm:$0xff]  ;;  %1002 = vst [vmem:[%s1554_s17 + $0x300] sm:$0xff] %v746_v47  ;;  %1003 = vst [vmem:[%s1554_s17 + $0x308] sm:$0xff] %v747_v48  ;;  %v752_v59 = vmul.f32 0.0, %v496_v50  ;;  %v498_v60 = vmax.f32 %v242_v46, 0.0  ;;  %v499_v61 = vmax.f32 %v243_v51, 0.0 }
  0x7b   : > { %1004 = vst [vmem:[%s1554_s17 + $0x310] sm:$0xff] %v748_v49  ;;  %v500_v62 = vmax.f32 %v244_v52, 0.0  ;;  %v247_v63 = vld [vmem:[%s1533_s30 + $0x368] sm:$0xff]  ;;  %v248_v0 = vld [vmem:[%s1533_s30 + $0x370] sm:$0xff]  ;;  %1005 = vst [vmem:[%s1554_s17 + $0x318] sm:$0xff] %v749_v53  ;;  %v753_v1 = vmul.f32 0.0, %v497_v56 }
  0x7c   : > { %1006 = vst [vmem:[%s1554_s17 + $0x320] sm:$0xff] %v750_v54  ;;  %1007 = vst [vmem:[%s1554_s17 + $0x328] sm:$0xff] %v751_v55  ;;  %v501_v2 = vmax.f32 %v245_v57, 0.0  ;;  %v502_v3 = vmax.f32 %v246_v58, 0.0  ;;  %v503_v4 = vmax.f32 %v247_v63, 0.0  ;;  %v249_v5 = vld [vmem:[%s1533_s30 + $0x378] sm:$0xff] }
  0x7d   : > { %v250_v6 = vld [vmem:[%s1533_s30 + $0x380] sm:$0xff]  ;;  %1008 = vst [vmem:[%s1554_s17 + $0x330] sm:$0xff] %v752_v59  ;;  %v754_v7 = vmul.f32 0.0, %v498_v60  ;;  %v755_v8 = vmul.f32 0.0, %v499_v61  ;;  %v756_v9 = vmul.f32 0.0, %v500_v62  ;;  %v504_v10 = vmax.f32 %v248_v0, 0.0 }
  0x7e   : > { %v251_v11 = vld [vmem:[%s1533_s30 + $0x388] sm:$0xff]  ;;  %v252_v12 = vld [vmem:[%s1533_s30 + $0x390] sm:$0xff]  ;;  %1009 = vst [vmem:[%s1554_s17 + $0x338] sm:$0xff] %v753_v1  ;;  %v757_v13 = vmul.f32 0.0, %v501_v2  ;;  %v758_v14 = vmul.f32 0.0, %v502_v3  ;;  %v759_v15 = vmul.f32 0.0, %v503_v4 }
  0x7f   : > { %v505_v16 = vmax.f32 %v249_v5, 0.0  ;;  %v253_v17 = vld [vmem:[%s1533_s30 + $0x398] sm:$0xff]  ;;  %v254_v18 = vld [vmem:[%s1533_s30 + $0x3a0] sm:$0xff]  ;;  %1010 = vst [vmem:[%s1554_s17 + $0x340] sm:$0xff] %v754_v7  ;;  %1011 = vst [vmem:[%s1554_s17 + $0x348] sm:$0xff] %v755_v8  ;;  %v760_v19 = vmul.f32 0.0, %v504_v10 }
  0x80   : > { %1012 = vst [vmem:[%s1554_s17 + $0x350] sm:$0xff] %v756_v9  ;;  %v506_v20 = vmax.f32 %v250_v6, 0.0  ;;  %v507_v21 = vmax.f32 %v251_v11, 0.0  ;;  %v508_v22 = vmax.f32 %v252_v12, 0.0  ;;  %v255_v23 = vld [vmem:[%s1533_s30 + $0x3a8] sm:$0xff]  ;;  %v256_v24 = vld [vmem:[%s1533_s30 + $0x3b0] sm:$0xff] }
  0x81   : > { %1013 = vst [vmem:[%s1554_s17 + $0x358] sm:$0xff] %v757_v13  ;;  %1014 = vst [vmem:[%s1554_s17 + $0x360] sm:$0xff] %v758_v14  ;;  %v761_v25 = vmul.f32 0.0, %v505_v16  ;;  %v509_v26 = vmax.f32 %v253_v17, 0.0  ;;  %v510_v27 = vmax.f32 %v254_v18, 0.0  ;;  %v511_v28 = vmax.f32 %v255_v23, 0.0 }
  0x82   : > { %1015 = vst [vmem:[%s1554_s17 + $0x368] sm:$0xff] %v759_v15  ;;  %v257_v29 = vld [vmem:[%s1533_s30 + $0x3b8] sm:$0xff]  ;;  %v258_v30 = vld [vmem:[%s1533_s30 + $0x3c0] sm:$0xff]  ;;  %1016 = vst [vmem:[%s1554_s17 + $0x370] sm:$0xff] %v760_v19  ;;  %v762_v31 = vmul.f32 0.0, %v506_v20  ;;  %v763_v32 = vmul.f32 0.0, %v507_v21 }
  0x83   : > { %v764_v33 = vmul.f32 0.0, %v508_v22  ;;  %v512_v34 = vmax.f32 %v256_v24, 0.0  ;;  %v259_v35 = vld [vmem:[%s1533_s30 + $0x3c8] sm:$0xff]  ;;  %v260_v36 = vld [vmem:[%s1533_s30 + $0x3d0] sm:$0xff]  ;;  %1017 = vst [vmem:[%s1554_s17 + $0x378] sm:$0xff] %v761_v25  ;;  %v765_v37 = vmul.f32 0.0, %v509_v26 }
  0x84   : > { %v766_v38 = vmul.f32 0.0, %v510_v27  ;;  %v767_v39 = vmul.f32 0.0, %v511_v28  ;;  %v513_v40 = vmax.f32 %v257_v29, 0.0  ;;  %v261_v41 = vld [vmem:[%s1533_s30 + $0x3d8] sm:$0xff]  ;;  %v262_v42 = vld [vmem:[%s1533_s30 + $0x3e0] sm:$0xff]  ;;  %1018 = vst [vmem:[%s1554_s17 + $0x380] sm:$0xff] %v762_v31 }
  0x85   : > { %1019 = vst [vmem:[%s1554_s17 + $0x388] sm:$0xff] %v763_v32  ;;  %1020 = vst [vmem:[%s1554_s17 + $0x390] sm:$0xff] %v764_v33  ;;  %v768_v43 = vmul.f32 0.0, %v512_v34  ;;  %v514_v44 = vmax.f32 %v258_v30, 0.0  ;;  %v515_v45 = vmax.f32 %v259_v35, 0.0  ;;  %v516_v46 = vmax.f32 %v260_v36, 0.0 }
  0x86   : > { %v263_v47 = vld [vmem:[%s1533_s30 + $0x3e8] sm:$0xff]  ;;  %v264_v48 = vld [vmem:[%s1533_s30 + $0x3f0] sm:$0xff]  ;;  %1021 = vst [vmem:[%s1554_s17 + $0x398] sm:$0xff] %v765_v37  ;;  %1022 = vst [vmem:[%s1554_s17 + $0x3a0] sm:$0xff] %v766_v38  ;;  %v769_v49 = vmul.f32 0.0, %v513_v40  ;;  %v517_v50 = vmax.f32 %v261_v41, 0.0 }
  0x87   : > { %1023 = vst [vmem:[%s1554_s17 + $0x3a8] sm:$0xff] %v767_v39  ;;  %v518_v51 = vmax.f32 %v262_v42, 0.0  ;;  %v519_v52 = vmax.f32 %v263_v47, 0.0  ;;  %v265_v53 = vld [vmem:[%s1533_s30 + $0x3f8] sm:$0xff]  ;;  %v266_v54 = vld [vmem:[%s1533_s30 + $0x400] sm:$0xff]  ;;  %1024 = vst [vmem:[%s1554_s17 + $0x3b0] sm:$0xff] %v768_v43 }
  0x88   : > { %v770_v55 = vmul.f32 0.0, %v514_v44  ;;  %v771_v56 = vmul.f32 0.0, %v515_v45  ;;  %v772_v57 = vmul.f32 0.0, %v516_v46  ;;  %v520_v58 = vmax.f32 %v264_v48, 0.0  ;;  %v267_v59 = vld [vmem:[%s1533_s30 + $0x408] sm:$0xff]  ;;  %v268_v60 = vld [vmem:[%s1533_s30 + $0x410] sm:$0xff] }
  0x89   : > { %1025 = vst [vmem:[%s1554_s17 + $0x3b8] sm:$0xff] %v769_v49  ;;  %v773_v61 = vmul.f32 0.0, %v517_v50  ;;  %v774_v62 = vmul.f32 0.0, %v518_v51  ;;  %v775_v63 = vmul.f32 0.0, %v519_v52  ;;  %v521_v0 = vmax.f32 %v265_v53, 0.0  ;;  %v269_v1 = vld [vmem:[%s1533_s30 + $0x418] sm:$0xff] }
  0x8a   : > { %v270_v2 = vld [vmem:[%s1533_s30 + $0x420] sm:$0xff]  ;;  %1026 = vst [vmem:[%s1554_s17 + $0x3c0] sm:$0xff] %v770_v55  ;;  %1027 = vst [vmem:[%s1554_s17 + $0x3c8] sm:$0xff] %v771_v56  ;;  %v776_v3 = vmul.f32 0.0, %v520_v58  ;;  %v522_v4 = vmax.f32 %v266_v54, 0.0  ;;  %v523_v5 = vmax.f32 %v267_v59, 0.0 }
  0x8b   : > { %1028 = vst [vmem:[%s1554_s17 + $0x3d0] sm:$0xff] %v772_v57  ;;  %v524_v6 = vmax.f32 %v268_v60, 0.0  ;;  %v271_v7 = vld [vmem:[%s1533_s30 + $0x428] sm:$0xff]  ;;  %v272_v8 = vld [vmem:[%s1533_s30 + $0x430] sm:$0xff]  ;;  %1029 = vst [vmem:[%s1554_s17 + $0x3d8] sm:$0xff] %v773_v61  ;;  %v777_v9 = vmul.f32 0.0, %v521_v0 }
  0x8c   : > { %1030 = vst [vmem:[%s1554_s17 + $0x3e0] sm:$0xff] %v774_v62  ;;  %1031 = vst [vmem:[%s1554_s17 + $0x3e8] sm:$0xff] %v775_v63  ;;  %v525_v10 = vmax.f32 %v269_v1, 0.0  ;;  %v526_v11 = vmax.f32 %v270_v2, 0.0  ;;  %v527_v12 = vmax.f32 %v271_v7, 0.0  ;;  %v273_v13 = vld [vmem:[%s1533_s30 + $0x438] sm:$0xff] }
  0x8d   : > { %v274_v14 = vld [vmem:[%s1533_s30 + $0x440] sm:$0xff]  ;;  %1032 = vst [vmem:[%s1554_s17 + $0x3f0] sm:$0xff] %v776_v3  ;;  %v778_v15 = vmul.f32 0.0, %v522_v4  ;;  %v779_v16 = vmul.f32 0.0, %v523_v5  ;;  %v780_v17 = vmul.f32 0.0, %v524_v6  ;;  %v528_v18 = vmax.f32 %v272_v8, 0.0 }
  0x8e   : > { %v275_v19 = vld [vmem:[%s1533_s30 + $0x448] sm:$0xff]  ;;  %v276_v20 = vld [vmem:[%s1533_s30 + $0x450] sm:$0xff]  ;;  %1033 = vst [vmem:[%s1554_s17 + $0x3f8] sm:$0xff] %v777_v9  ;;  %v781_v21 = vmul.f32 0.0, %v525_v10  ;;  %v782_v22 = vmul.f32 0.0, %v526_v11  ;;  %v783_v23 = vmul.f32 0.0, %v527_v12 }
  0x8f   : > { %v529_v24 = vmax.f32 %v273_v13, 0.0  ;;  %v277_v25 = vld [vmem:[%s1533_s30 + $0x458] sm:$0xff]  ;;  %v278_v26 = vld [vmem:[%s1533_s30 + $0x460] sm:$0xff]  ;;  %1034 = vst [vmem:[%s1554_s17 + $0x400] sm:$0xff] %v778_v15  ;;  %1035 = vst [vmem:[%s1554_s17 + $0x408] sm:$0xff] %v779_v16  ;;  %v784_v27 = vmul.f32 0.0, %v528_v18 }
  0x90   : > { %1036 = vst [vmem:[%s1554_s17 + $0x410] sm:$0xff] %v780_v17  ;;  %v530_v28 = vmax.f32 %v274_v14, 0.0  ;;  %v531_v29 = vmax.f32 %v275_v19, 0.0  ;;  %v532_v30 = vmax.f32 %v276_v20, 0.0  ;;  %v279_v31 = vld [vmem:[%s1533_s30 + $0x468] sm:$0xff]  ;;  %v280_v32 = vld [vmem:[%s1533_s30 + $0x470] sm:$0xff] }
  0x91   : > { %1037 = vst [vmem:[%s1554_s17 + $0x418] sm:$0xff] %v781_v21  ;;  %1038 = vst [vmem:[%s1554_s17 + $0x420] sm:$0xff] %v782_v22  ;;  %v785_v33 = vmul.f32 0.0, %v529_v24  ;;  %v533_v34 = vmax.f32 %v277_v25, 0.0  ;;  %v534_v35 = vmax.f32 %v278_v26, 0.0  ;;  %v535_v36 = vmax.f32 %v279_v31, 0.0 }
  0x92   : > { %1039 = vst [vmem:[%s1554_s17 + $0x428] sm:$0xff] %v783_v23  ;;  %v281_v37 = vld [vmem:[%s1533_s30 + $0x478] sm:$0xff]  ;;  %v282_v38 = vld [vmem:[%s1533_s30 + $0x480] sm:$0xff]  ;;  %1040 = vst [vmem:[%s1554_s17 + $0x430] sm:$0xff] %v784_v27  ;;  %v786_v39 = vmul.f32 0.0, %v530_v28  ;;  %v787_v40 = vmul.f32 0.0, %v531_v29 }
  0x93   : > { %v788_v41 = vmul.f32 0.0, %v532_v30  ;;  %v536_v42 = vmax.f32 %v280_v32, 0.0  ;;  %v283_v43 = vld [vmem:[%s1533_s30 + $0x488] sm:$0xff]  ;;  %v284_v44 = vld [vmem:[%s1533_s30 + $0x490] sm:$0xff]  ;;  %1041 = vst [vmem:[%s1554_s17 + $0x438] sm:$0xff] %v785_v33  ;;  %v789_v45 = vmul.f32 0.0, %v533_v34 }
  0x94   : > { %v790_v46 = vmul.f32 0.0, %v534_v35  ;;  %v791_v47 = vmul.f32 0.0, %v535_v36  ;;  %v537_v48 = vmax.f32 %v281_v37, 0.0  ;;  %v285_v49 = vld [vmem:[%s1533_s30 + $0x498] sm:$0xff]  ;;  %v286_v50 = vld [vmem:[%s1533_s30 + $0x4a0] sm:$0xff]  ;;  %1042 = vst [vmem:[%s1554_s17 + $0x440] sm:$0xff] %v786_v39 }
  0x95   : > { %1043 = vst [vmem:[%s1554_s17 + $0x448] sm:$0xff] %v787_v40  ;;  %1044 = vst [vmem:[%s1554_s17 + $0x450] sm:$0xff] %v788_v41  ;;  %v792_v51 = vmul.f32 0.0, %v536_v42  ;;  %v538_v52 = vmax.f32 %v282_v38, 0.0  ;;  %v539_v53 = vmax.f32 %v283_v43, 0.0  ;;  %v540_v54 = vmax.f32 %v284_v44, 0.0 }
  0x96   : > { %v287_v55 = vld [vmem:[%s1533_s30 + $0x4a8] sm:$0xff]  ;;  %v288_v56 = vld [vmem:[%s1533_s30 + $0x4b0] sm:$0xff]  ;;  %1045 = vst [vmem:[%s1554_s17 + $0x458] sm:$0xff] %v789_v45  ;;  %1046 = vst [vmem:[%s1554_s17 + $0x460] sm:$0xff] %v790_v46  ;;  %v793_v57 = vmul.f32 0.0, %v537_v48  ;;  %v541_v58 = vmax.f32 %v285_v49, 0.0 }
  0x97   : > { %1047 = vst [vmem:[%s1554_s17 + $0x468] sm:$0xff] %v791_v47  ;;  %v542_v59 = vmax.f32 %v286_v50, 0.0  ;;  %v543_v60 = vmax.f32 %v287_v55, 0.0  ;;  %v289_v61 = vld [vmem:[%s1533_s30 + $0x4b8] sm:$0xff]  ;;  %v290_v62 = vld [vmem:[%s1533_s30 + $0x4c0] sm:$0xff]  ;;  %1048 = vst [vmem:[%s1554_s17 + $0x470] sm:$0xff] %v792_v51 }
  0x98   : > { %v794_v63 = vmul.f32 0.0, %v538_v52  ;;  %v795_v0 = vmul.f32 0.0, %v539_v53  ;;  %v796_v1 = vmul.f32 0.0, %v540_v54  ;;  %v544_v2 = vmax.f32 %v288_v56, 0.0  ;;  %v291_v3 = vld [vmem:[%s1533_s30 + $0x4c8] sm:$0xff]  ;;  %v292_v4 = vld [vmem:[%s1533_s30 + $0x4d0] sm:$0xff] }
  0x99   : > { %1049 = vst [vmem:[%s1554_s17 + $0x478] sm:$0xff] %v793_v57  ;;  %v797_v5 = vmul.f32 0.0, %v541_v58  ;;  %v798_v6 = vmul.f32 0.0, %v542_v59  ;;  %v799_v7 = vmul.f32 0.0, %v543_v60  ;;  %v545_v8 = vmax.f32 %v289_v61, 0.0  ;;  %v293_v9 = vld [vmem:[%s1533_s30 + $0x4d8] sm:$0xff] }
  0x9a   : > { %v294_v10 = vld [vmem:[%s1533_s30 + $0x4e0] sm:$0xff]  ;;  %1050 = vst [vmem:[%s1554_s17 + $0x480] sm:$0xff] %v794_v63  ;;  %1051 = vst [vmem:[%s1554_s17 + $0x488] sm:$0xff] %v795_v0  ;;  %v800_v11 = vmul.f32 0.0, %v544_v2  ;;  %v546_v12 = vmax.f32 %v290_v62, 0.0  ;;  %v547_v13 = vmax.f32 %v291_v3, 0.0 }
  0x9b   : > { %1052 = vst [vmem:[%s1554_s17 + $0x490] sm:$0xff] %v796_v1  ;;  %v548_v14 = vmax.f32 %v292_v4, 0.0  ;;  %v295_v15 = vld [vmem:[%s1533_s30 + $0x4e8] sm:$0xff]  ;;  %v296_v16 = vld [vmem:[%s1533_s30 + $0x4f0] sm:$0xff]  ;;  %1053 = vst [vmem:[%s1554_s17 + $0x498] sm:$0xff] %v797_v5  ;;  %v801_v17 = vmul.f32 0.0, %v545_v8 }
  0x9c   : > { %1054 = vst [vmem:[%s1554_s17 + $0x4a0] sm:$0xff] %v798_v6  ;;  %1055 = vst [vmem:[%s1554_s17 + $0x4a8] sm:$0xff] %v799_v7  ;;  %v549_v18 = vmax.f32 %v293_v9, 0.0  ;;  %v550_v19 = vmax.f32 %v294_v10, 0.0  ;;  %v551_v20 = vmax.f32 %v295_v15, 0.0  ;;  %v297_v21 = vld [vmem:[%s1533_s30 + $0x4f8] sm:$0xff] }
  0x9d   : > { %v298_v22 = vld [vmem:[%s1533_s30 + $0x500] sm:$0xff]  ;;  %1056 = vst [vmem:[%s1554_s17 + $0x4b0] sm:$0xff] %v800_v11  ;;  %v802_v23 = vmul.f32 0.0, %v546_v12  ;;  %v803_v24 = vmul.f32 0.0, %v547_v13  ;;  %v804_v25 = vmul.f32 0.0, %v548_v14  ;;  %v552_v26 = vmax.f32 %v296_v16, 0.0 }
  0x9e   : > { %v299_v27 = vld [vmem:[%s1533_s30 + $0x508] sm:$0xff]  ;;  %v300_v28 = vld [vmem:[%s1533_s30 + $0x510] sm:$0xff]  ;;  %1057 = vst [vmem:[%s1554_s17 + $0x4b8] sm:$0xff] %v801_v17  ;;  %v805_v29 = vmul.f32 0.0, %v549_v18  ;;  %v806_v30 = vmul.f32 0.0, %v550_v19  ;;  %v807_v31 = vmul.f32 0.0, %v551_v20 }
  0x9f   : > { %v553_v32 = vmax.f32 %v297_v21, 0.0  ;;  %v301_v33 = vld [vmem:[%s1533_s30 + $0x518] sm:$0xff]  ;;  %v302_v34 = vld [vmem:[%s1533_s30 + $0x520] sm:$0xff]  ;;  %1058 = vst [vmem:[%s1554_s17 + $0x4c0] sm:$0xff] %v802_v23  ;;  %1059 = vst [vmem:[%s1554_s17 + $0x4c8] sm:$0xff] %v803_v24  ;;  %v808_v35 = vmul.f32 0.0, %v552_v26 }
  0xa0   : > { %1060 = vst [vmem:[%s1554_s17 + $0x4d0] sm:$0xff] %v804_v25  ;;  %v554_v36 = vmax.f32 %v298_v22, 0.0  ;;  %v555_v37 = vmax.f32 %v299_v27, 0.0  ;;  %v556_v38 = vmax.f32 %v300_v28, 0.0  ;;  %v303_v39 = vld [vmem:[%s1533_s30 + $0x528] sm:$0xff]  ;;  %v304_v40 = vld [vmem:[%s1533_s30 + $0x530] sm:$0xff] }
  0xa1   : > { %1061 = vst [vmem:[%s1554_s17 + $0x4d8] sm:$0xff] %v805_v29  ;;  %1062 = vst [vmem:[%s1554_s17 + $0x4e0] sm:$0xff] %v806_v30  ;;  %v809_v41 = vmul.f32 0.0, %v553_v32  ;;  %v557_v42 = vmax.f32 %v301_v33, 0.0  ;;  %v558_v43 = vmax.f32 %v302_v34, 0.0  ;;  %v559_v44 = vmax.f32 %v303_v39, 0.0 }
  0xa2   : > { %1063 = vst [vmem:[%s1554_s17 + $0x4e8] sm:$0xff] %v807_v31  ;;  %v305_v45 = vld [vmem:[%s1533_s30 + $0x538] sm:$0xff]  ;;  %v306_v46 = vld [vmem:[%s1533_s30 + $0x540] sm:$0xff]  ;;  %1064 = vst [vmem:[%s1554_s17 + $0x4f0] sm:$0xff] %v808_v35  ;;  %v810_v47 = vmul.f32 0.0, %v554_v36  ;;  %v811_v48 = vmul.f32 0.0, %v555_v37 }
  0xa3   : > { %v812_v49 = vmul.f32 0.0, %v556_v38  ;;  %v560_v50 = vmax.f32 %v304_v40, 0.0  ;;  %v307_v51 = vld [vmem:[%s1533_s30 + $0x548] sm:$0xff]  ;;  %v308_v52 = vld [vmem:[%s1533_s30 + $0x550] sm:$0xff]  ;;  %1065 = vst [vmem:[%s1554_s17 + $0x4f8] sm:$0xff] %v809_v41  ;;  %v813_v53 = vmul.f32 0.0, %v557_v42 }
  0xa4   : > { %v814_v54 = vmul.f32 0.0, %v558_v43  ;;  %v815_v55 = vmul.f32 0.0, %v559_v44  ;;  %v561_v56 = vmax.f32 %v305_v45, 0.0  ;;  %v309_v57 = vld [vmem:[%s1533_s30 + $0x558] sm:$0xff]  ;;  %v310_v58 = vld [vmem:[%s1533_s30 + $0x560] sm:$0xff]  ;;  %1066 = vst [vmem:[%s1554_s17 + $0x500] sm:$0xff] %v810_v47 }
  0xa5   : > { %1067 = vst [vmem:[%s1554_s17 + $0x508] sm:$0xff] %v811_v48  ;;  %1068 = vst [vmem:[%s1554_s17 + $0x510] sm:$0xff] %v812_v49  ;;  %v816_v59 = vmul.f32 0.0, %v560_v50  ;;  %v562_v60 = vmax.f32 %v306_v46, 0.0  ;;  %v563_v61 = vmax.f32 %v307_v51, 0.0  ;;  %v564_v62 = vmax.f32 %v308_v52, 0.0 }
  0xa6   : > { %v311_v63 = vld [vmem:[%s1533_s30 + $0x568] sm:$0xff]  ;;  %v312_v0 = vld [vmem:[%s1533_s30 + $0x570] sm:$0xff]  ;;  %1069 = vst [vmem:[%s1554_s17 + $0x518] sm:$0xff] %v813_v53  ;;  %1070 = vst [vmem:[%s1554_s17 + $0x520] sm:$0xff] %v814_v54  ;;  %v817_v1 = vmul.f32 0.0, %v561_v56  ;;  %v565_v2 = vmax.f32 %v309_v57, 0.0 }
  0xa7   : > { %1071 = vst [vmem:[%s1554_s17 + $0x528] sm:$0xff] %v815_v55  ;;  %v566_v3 = vmax.f32 %v310_v58, 0.0  ;;  %v567_v4 = vmax.f32 %v311_v63, 0.0  ;;  %v313_v5 = vld [vmem:[%s1533_s30 + $0x578] sm:$0xff]  ;;  %v314_v6 = vld [vmem:[%s1533_s30 + $0x580] sm:$0xff]  ;;  %1072 = vst [vmem:[%s1554_s17 + $0x530] sm:$0xff] %v816_v59 }
  0xa8   : > { %v818_v7 = vmul.f32 0.0, %v562_v60  ;;  %v819_v8 = vmul.f32 0.0, %v563_v61  ;;  %v820_v9 = vmul.f32 0.0, %v564_v62  ;;  %v568_v10 = vmax.f32 %v312_v0, 0.0  ;;  %v315_v11 = vld [vmem:[%s1533_s30 + $0x588] sm:$0xff]  ;;  %v316_v12 = vld [vmem:[%s1533_s30 + $0x590] sm:$0xff] }
  0xa9   : > { %1073 = vst [vmem:[%s1554_s17 + $0x538] sm:$0xff] %v817_v1  ;;  %v821_v13 = vmul.f32 0.0, %v565_v2  ;;  %v822_v14 = vmul.f32 0.0, %v566_v3  ;;  %v823_v15 = vmul.f32 0.0, %v567_v4  ;;  %v569_v16 = vmax.f32 %v313_v5, 0.0  ;;  %v317_v17 = vld [vmem:[%s1533_s30 + $0x598] sm:$0xff] }
  0xaa   : > { %v318_v18 = vld [vmem:[%s1533_s30 + $0x5a0] sm:$0xff]  ;;  %1074 = vst [vmem:[%s1554_s17 + $0x540] sm:$0xff] %v818_v7  ;;  %1075 = vst [vmem:[%s1554_s17 + $0x548] sm:$0xff] %v819_v8  ;;  %v824_v19 = vmul.f32 0.0, %v568_v10  ;;  %v570_v20 = vmax.f32 %v314_v6, 0.0  ;;  %v571_v21 = vmax.f32 %v315_v11, 0.0 }
  0xab   : > { %1076 = vst [vmem:[%s1554_s17 + $0x550] sm:$0xff] %v820_v9  ;;  %v572_v22 = vmax.f32 %v316_v12, 0.0  ;;  %v319_v23 = vld [vmem:[%s1533_s30 + $0x5a8] sm:$0xff]  ;;  %v320_v24 = vld [vmem:[%s1533_s30 + $0x5b0] sm:$0xff]  ;;  %1077 = vst [vmem:[%s1554_s17 + $0x558] sm:$0xff] %v821_v13  ;;  %v825_v25 = vmul.f32 0.0, %v569_v16 }
  0xac   : > { %1078 = vst [vmem:[%s1554_s17 + $0x560] sm:$0xff] %v822_v14  ;;  %1079 = vst [vmem:[%s1554_s17 + $0x568] sm:$0xff] %v823_v15  ;;  %v573_v26 = vmax.f32 %v317_v17, 0.0  ;;  %v574_v27 = vmax.f32 %v318_v18, 0.0  ;;  %v575_v28 = vmax.f32 %v319_v23, 0.0  ;;  %v321_v29 = vld [vmem:[%s1533_s30 + $0x5b8] sm:$0xff] }
  0xad   : > { %v322_v30 = vld [vmem:[%s1533_s30 + $0x5c0] sm:$0xff]  ;;  %1080 = vst [vmem:[%s1554_s17 + $0x570] sm:$0xff] %v824_v19  ;;  %v826_v31 = vmul.f32 0.0, %v570_v20  ;;  %v827_v32 = vmul.f32 0.0, %v571_v21  ;;  %v828_v33 = vmul.f32 0.0, %v572_v22  ;;  %v576_v34 = vmax.f32 %v320_v24, 0.0 }
  0xae   : > { %v323_v35 = vld [vmem:[%s1533_s30 + $0x5c8] sm:$0xff]  ;;  %v324_v36 = vld [vmem:[%s1533_s30 + $0x5d0] sm:$0xff]  ;;  %1081 = vst [vmem:[%s1554_s17 + $0x578] sm:$0xff] %v825_v25  ;;  %v829_v37 = vmul.f32 0.0, %v573_v26  ;;  %v830_v38 = vmul.f32 0.0, %v574_v27  ;;  %v831_v39 = vmul.f32 0.0, %v575_v28 }
  0xaf   : > { %v577_v40 = vmax.f32 %v321_v29, 0.0  ;;  %v325_v41 = vld [vmem:[%s1533_s30 + $0x5d8] sm:$0xff]  ;;  %v326_v42 = vld [vmem:[%s1533_s30 + $0x5e0] sm:$0xff]  ;;  %1082 = vst [vmem:[%s1554_s17 + $0x580] sm:$0xff] %v826_v31  ;;  %1083 = vst [vmem:[%s1554_s17 + $0x588] sm:$0xff] %v827_v32  ;;  %v832_v43 = vmul.f32 0.0, %v576_v34 }
  0xb0   : > { %1084 = vst [vmem:[%s1554_s17 + $0x590] sm:$0xff] %v828_v33  ;;  %v578_v44 = vmax.f32 %v322_v30, 0.0  ;;  %v579_v45 = vmax.f32 %v323_v35, 0.0  ;;  %v580_v46 = vmax.f32 %v324_v36, 0.0  ;;  %v327_v47 = vld [vmem:[%s1533_s30 + $0x5e8] sm:$0xff]  ;;  %v328_v48 = vld [vmem:[%s1533_s30 + $0x5f0] sm:$0xff] }
  0xb1   : > { %1085 = vst [vmem:[%s1554_s17 + $0x598] sm:$0xff] %v829_v37  ;;  %1086 = vst [vmem:[%s1554_s17 + $0x5a0] sm:$0xff] %v830_v38  ;;  %v833_v49 = vmul.f32 0.0, %v577_v40  ;;  %v581_v50 = vmax.f32 %v325_v41, 0.0  ;;  %v582_v51 = vmax.f32 %v326_v42, 0.0  ;;  %v583_v52 = vmax.f32 %v327_v47, 0.0 }
  0xb2   : > { %1087 = vst [vmem:[%s1554_s17 + $0x5a8] sm:$0xff] %v831_v39  ;;  %v329_v53 = vld [vmem:[%s1533_s30 + $0x5f8] sm:$0xff]  ;;  %v330_v54 = vld [vmem:[%s1533_s30 + $0x600] sm:$0xff]  ;;  %1088 = vst [vmem:[%s1554_s17 + $0x5b0] sm:$0xff] %v832_v43  ;;  %v834_v55 = vmul.f32 0.0, %v578_v44  ;;  %v835_v56 = vmul.f32 0.0, %v579_v45 }
  0xb3   : > { %v836_v57 = vmul.f32 0.0, %v580_v46  ;;  %v584_v58 = vmax.f32 %v328_v48, 0.0  ;;  %v331_v59 = vld [vmem:[%s1533_s30 + $0x608] sm:$0xff]  ;;  %v332_v60 = vld [vmem:[%s1533_s30 + $0x610] sm:$0xff]  ;;  %1089 = vst [vmem:[%s1554_s17 + $0x5b8] sm:$0xff] %v833_v49  ;;  %v837_v61 = vmul.f32 0.0, %v581_v50 }
  0xb4   : > { %v838_v62 = vmul.f32 0.0, %v582_v51  ;;  %v839_v63 = vmul.f32 0.0, %v583_v52  ;;  %v585_v0 = vmax.f32 %v329_v53, 0.0  ;;  %v333_v1 = vld [vmem:[%s1533_s30 + $0x618] sm:$0xff]  ;;  %v334_v2 = vld [vmem:[%s1533_s30 + $0x620] sm:$0xff]  ;;  %1090 = vst [vmem:[%s1554_s17 + $0x5c0] sm:$0xff] %v834_v55 }
  0xb5   : > { %1091 = vst [vmem:[%s1554_s17 + $0x5c8] sm:$0xff] %v835_v56  ;;  %1092 = vst [vmem:[%s1554_s17 + $0x5d0] sm:$0xff] %v836_v57  ;;  %v840_v3 = vmul.f32 0.0, %v584_v58  ;;  %v586_v4 = vmax.f32 %v330_v54, 0.0  ;;  %v587_v5 = vmax.f32 %v331_v59, 0.0  ;;  %v588_v6 = vmax.f32 %v332_v60, 0.0 }
  0xb6   : > { %v335_v7 = vld [vmem:[%s1533_s30 + $0x628] sm:$0xff]  ;;  %v336_v8 = vld [vmem:[%s1533_s30 + $0x630] sm:$0xff]  ;;  %1093 = vst [vmem:[%s1554_s17 + $0x5d8] sm:$0xff] %v837_v61  ;;  %1094 = vst [vmem:[%s1554_s17 + $0x5e0] sm:$0xff] %v838_v62  ;;  %v841_v9 = vmul.f32 0.0, %v585_v0  ;;  %v589_v10 = vmax.f32 %v333_v1, 0.0 }
  0xb7   : > { %1095 = vst [vmem:[%s1554_s17 + $0x5e8] sm:$0xff] %v839_v63  ;;  %v590_v11 = vmax.f32 %v334_v2, 0.0  ;;  %v591_v12 = vmax.f32 %v335_v7, 0.0  ;;  %v337_v13 = vld [vmem:[%s1533_s30 + $0x638] sm:$0xff]  ;;  %v338_v14 = vld [vmem:[%s1533_s30 + $0x640] sm:$0xff]  ;;  %1096 = vst [vmem:[%s1554_s17 + $0x5f0] sm:$0xff] %v840_v3 }
  0xb8   : > { %v842_v15 = vmul.f32 0.0, %v586_v4  ;;  %v843_v16 = vmul.f32 0.0, %v587_v5  ;;  %v844_v17 = vmul.f32 0.0, %v588_v6  ;;  %v592_v18 = vmax.f32 %v336_v8, 0.0  ;;  %v339_v19 = vld [vmem:[%s1533_s30 + $0x648] sm:$0xff]  ;;  %v340_v20 = vld [vmem:[%s1533_s30 + $0x650] sm:$0xff] }
  0xb9   : > { %1097 = vst [vmem:[%s1554_s17 + $0x5f8] sm:$0xff] %v841_v9  ;;  %v845_v21 = vmul.f32 0.0, %v589_v10  ;;  %v846_v22 = vmul.f32 0.0, %v590_v11  ;;  %v847_v23 = vmul.f32 0.0, %v591_v12  ;;  %v593_v24 = vmax.f32 %v337_v13, 0.0  ;;  %v341_v25 = vld [vmem:[%s1533_s30 + $0x658] sm:$0xff] }
  0xba   : > { %v342_v26 = vld [vmem:[%s1533_s30 + $0x660] sm:$0xff]  ;;  %1098 = vst [vmem:[%s1554_s17 + $0x600] sm:$0xff] %v842_v15  ;;  %1099 = vst [vmem:[%s1554_s17 + $0x608] sm:$0xff] %v843_v16  ;;  %v848_v27 = vmul.f32 0.0, %v592_v18  ;;  %v594_v28 = vmax.f32 %v338_v14, 0.0  ;;  %v595_v29 = vmax.f32 %v339_v19, 0.0 }
  0xbb   : > { %1100 = vst [vmem:[%s1554_s17 + $0x610] sm:$0xff] %v844_v17  ;;  %v596_v30 = vmax.f32 %v340_v20, 0.0  ;;  %v343_v31 = vld [vmem:[%s1533_s30 + $0x668] sm:$0xff]  ;;  %v344_v32 = vld [vmem:[%s1533_s30 + $0x670] sm:$0xff]  ;;  %1101 = vst [vmem:[%s1554_s17 + $0x618] sm:$0xff] %v845_v21  ;;  %v849_v33 = vmul.f32 0.0, %v593_v24 }
  0xbc   : > { %1102 = vst [vmem:[%s1554_s17 + $0x620] sm:$0xff] %v846_v22  ;;  %1103 = vst [vmem:[%s1554_s17 + $0x628] sm:$0xff] %v847_v23  ;;  %v597_v34 = vmax.f32 %v341_v25, 0.0  ;;  %v598_v35 = vmax.f32 %v342_v26, 0.0  ;;  %v599_v36 = vmax.f32 %v343_v31, 0.0  ;;  %v345_v37 = vld [vmem:[%s1533_s30 + $0x678] sm:$0xff] }
  0xbd   : > { %v346_v38 = vld [vmem:[%s1533_s30 + $0x680] sm:$0xff]  ;;  %1104 = vst [vmem:[%s1554_s17 + $0x630] sm:$0xff] %v848_v27  ;;  %v850_v39 = vmul.f32 0.0, %v594_v28  ;;  %v851_v40 = vmul.f32 0.0, %v595_v29  ;;  %v852_v41 = vmul.f32 0.0, %v596_v30  ;;  %v600_v42 = vmax.f32 %v344_v32, 0.0 }
  0xbe   : > { %v347_v43 = vld [vmem:[%s1533_s30 + $0x688] sm:$0xff]  ;;  %v348_v44 = vld [vmem:[%s1533_s30 + $0x690] sm:$0xff]  ;;  %1105 = vst [vmem:[%s1554_s17 + $0x638] sm:$0xff] %v849_v33  ;;  %v853_v45 = vmul.f32 0.0, %v597_v34  ;;  %v854_v46 = vmul.f32 0.0, %v598_v35  ;;  %v855_v47 = vmul.f32 0.0, %v599_v36 }
  0xbf   : > { %v601_v48 = vmax.f32 %v345_v37, 0.0  ;;  %v349_v49 = vld [vmem:[%s1533_s30 + $0x698] sm:$0xff]  ;;  %v350_v50 = vld [vmem:[%s1533_s30 + $0x6a0] sm:$0xff]  ;;  %1106 = vst [vmem:[%s1554_s17 + $0x640] sm:$0xff] %v850_v39  ;;  %1107 = vst [vmem:[%s1554_s17 + $0x648] sm:$0xff] %v851_v40  ;;  %v856_v51 = vmul.f32 0.0, %v600_v42 }
  0xc0   : > { %1108 = vst [vmem:[%s1554_s17 + $0x650] sm:$0xff] %v852_v41  ;;  %v602_v52 = vmax.f32 %v346_v38, 0.0  ;;  %v603_v53 = vmax.f32 %v347_v43, 0.0  ;;  %v604_v54 = vmax.f32 %v348_v44, 0.0  ;;  %v351_v55 = vld [vmem:[%s1533_s30 + $0x6a8] sm:$0xff]  ;;  %v352_v56 = vld [vmem:[%s1533_s30 + $0x6b0] sm:$0xff] }
  0xc1   : > { %1109 = vst [vmem:[%s1554_s17 + $0x658] sm:$0xff] %v853_v45  ;;  %1110 = vst [vmem:[%s1554_s17 + $0x660] sm:$0xff] %v854_v46  ;;  %v857_v57 = vmul.f32 0.0, %v601_v48  ;;  %v605_v58 = vmax.f32 %v349_v49, 0.0  ;;  %v606_v59 = vmax.f32 %v350_v50, 0.0  ;;  %v607_v60 = vmax.f32 %v351_v55, 0.0 }
  0xc2   : > { %1111 = vst [vmem:[%s1554_s17 + $0x668] sm:$0xff] %v855_v47  ;;  %v353_v61 = vld [vmem:[%s1533_s30 + $0x6b8] sm:$0xff]  ;;  %v354_v62 = vld [vmem:[%s1533_s30 + $0x6c0] sm:$0xff]  ;;  %1112 = vst [vmem:[%s1554_s17 + $0x670] sm:$0xff] %v856_v51  ;;  %v858_v63 = vmul.f32 0.0, %v602_v52  ;;  %v859_v0 = vmul.f32 0.0, %v603_v53 }
  0xc3   : > { %v860_v1 = vmul.f32 0.0, %v604_v54  ;;  %v608_v2 = vmax.f32 %v352_v56, 0.0  ;;  %v355_v3 = vld [vmem:[%s1533_s30 + $0x6c8] sm:$0xff]  ;;  %v356_v4 = vld [vmem:[%s1533_s30 + $0x6d0] sm:$0xff]  ;;  %1113 = vst [vmem:[%s1554_s17 + $0x678] sm:$0xff] %v857_v57  ;;  %v861_v5 = vmul.f32 0.0, %v605_v58 }
  0xc4   : > { %v862_v6 = vmul.f32 0.0, %v606_v59  ;;  %v863_v7 = vmul.f32 0.0, %v607_v60  ;;  %v609_v8 = vmax.f32 %v353_v61, 0.0  ;;  %v357_v9 = vld [vmem:[%s1533_s30 + $0x6d8] sm:$0xff]  ;;  %v358_v10 = vld [vmem:[%s1533_s30 + $0x6e0] sm:$0xff]  ;;  %1114 = vst [vmem:[%s1554_s17 + $0x680] sm:$0xff] %v858_v63 }
  0xc5   : > { %1115 = vst [vmem:[%s1554_s17 + $0x688] sm:$0xff] %v859_v0  ;;  %1116 = vst [vmem:[%s1554_s17 + $0x690] sm:$0xff] %v860_v1  ;;  %v864_v11 = vmul.f32 0.0, %v608_v2  ;;  %v610_v12 = vmax.f32 %v354_v62, 0.0  ;;  %v611_v13 = vmax.f32 %v355_v3, 0.0  ;;  %v612_v14 = vmax.f32 %v356_v4, 0.0 }
  0xc6   : > { %v359_v15 = vld [vmem:[%s1533_s30 + $0x6e8] sm:$0xff]  ;;  %v360_v16 = vld [vmem:[%s1533_s30 + $0x6f0] sm:$0xff]  ;;  %1117 = vst [vmem:[%s1554_s17 + $0x698] sm:$0xff] %v861_v5  ;;  %1118 = vst [vmem:[%s1554_s17 + $0x6a0] sm:$0xff] %v862_v6  ;;  %v865_v17 = vmul.f32 0.0, %v609_v8  ;;  %v613_v18 = vmax.f32 %v357_v9, 0.0 }
  0xc7   : > { %1119 = vst [vmem:[%s1554_s17 + $0x6a8] sm:$0xff] %v863_v7  ;;  %v614_v19 = vmax.f32 %v358_v10, 0.0  ;;  %v615_v20 = vmax.f32 %v359_v15, 0.0  ;;  %v361_v21 = vld [vmem:[%s1533_s30 + $0x6f8] sm:$0xff]  ;;  %v362_v22 = vld [vmem:[%s1533_s30 + $0x700] sm:$0xff]  ;;  %1120 = vst [vmem:[%s1554_s17 + $0x6b0] sm:$0xff] %v864_v11 }
  0xc8   : > { %v866_v23 = vmul.f32 0.0, %v610_v12  ;;  %v867_v24 = vmul.f32 0.0, %v611_v13  ;;  %v868_v25 = vmul.f32 0.0, %v612_v14  ;;  %v616_v26 = vmax.f32 %v360_v16, 0.0  ;;  %v363_v27 = vld [vmem:[%s1533_s30 + $0x708] sm:$0xff]  ;;  %v364_v28 = vld [vmem:[%s1533_s30 + $0x710] sm:$0xff] }
  0xc9   : > { %1121 = vst [vmem:[%s1554_s17 + $0x6b8] sm:$0xff] %v865_v17  ;;  %v869_v29 = vmul.f32 0.0, %v613_v18  ;;  %v870_v30 = vmul.f32 0.0, %v614_v19  ;;  %v871_v31 = vmul.f32 0.0, %v615_v20  ;;  %v617_v32 = vmax.f32 %v361_v21, 0.0  ;;  %v365_v33 = vld [vmem:[%s1533_s30 + $0x718] sm:$0xff] }
  0xca   : > { %v366_v34 = vld [vmem:[%s1533_s30 + $0x720] sm:$0xff]  ;;  %1122 = vst [vmem:[%s1554_s17 + $0x6c0] sm:$0xff] %v866_v23  ;;  %1123 = vst [vmem:[%s1554_s17 + $0x6c8] sm:$0xff] %v867_v24  ;;  %v872_v35 = vmul.f32 0.0, %v616_v26  ;;  %v618_v36 = vmax.f32 %v362_v22, 0.0  ;;  %v619_v37 = vmax.f32 %v363_v27, 0.0 }
  0xcb   : > { %1124 = vst [vmem:[%s1554_s17 + $0x6d0] sm:$0xff] %v868_v25  ;;  %v620_v38 = vmax.f32 %v364_v28, 0.0  ;;  %v367_v39 = vld [vmem:[%s1533_s30 + $0x728] sm:$0xff]  ;;  %v368_v40 = vld [vmem:[%s1533_s30 + $0x730] sm:$0xff]  ;;  %1125 = vst [vmem:[%s1554_s17 + $0x6d8] sm:$0xff] %v869_v29  ;;  %v873_v41 = vmul.f32 0.0, %v617_v32 }
  0xcc   : > { %1126 = vst [vmem:[%s1554_s17 + $0x6e0] sm:$0xff] %v870_v30  ;;  %1127 = vst [vmem:[%s1554_s17 + $0x6e8] sm:$0xff] %v871_v31  ;;  %v621_v42 = vmax.f32 %v365_v33, 0.0  ;;  %v622_v43 = vmax.f32 %v366_v34, 0.0  ;;  %v623_v44 = vmax.f32 %v367_v39, 0.0  ;;  %v369_v45 = vld [vmem:[%s1533_s30 + $0x738] sm:$0xff] }
  0xcd   : > { %v370_v46 = vld [vmem:[%s1533_s30 + $0x740] sm:$0xff]  ;;  %1128 = vst [vmem:[%s1554_s17 + $0x6f0] sm:$0xff] %v872_v35  ;;  %v874_v47 = vmul.f32 0.0, %v618_v36  ;;  %v875_v48 = vmul.f32 0.0, %v619_v37  ;;  %v876_v49 = vmul.f32 0.0, %v620_v38  ;;  %v624_v50 = vmax.f32 %v368_v40, 0.0 }
  0xce   : > { %v371_v51 = vld [vmem:[%s1533_s30 + $0x748] sm:$0xff]  ;;  %v372_v52 = vld [vmem:[%s1533_s30 + $0x750] sm:$0xff]  ;;  %1129 = vst [vmem:[%s1554_s17 + $0x6f8] sm:$0xff] %v873_v41  ;;  %v877_v53 = vmul.f32 0.0, %v621_v42  ;;  %v878_v54 = vmul.f32 0.0, %v622_v43  ;;  %v879_v55 = vmul.f32 0.0, %v623_v44 }
  0xcf   : > { %v625_v56 = vmax.f32 %v369_v45, 0.0  ;;  %v373_v57 = vld [vmem:[%s1533_s30 + $0x758] sm:$0xff]  ;;  %v374_v58 = vld [vmem:[%s1533_s30 + $0x760] sm:$0xff]  ;;  %1130 = vst [vmem:[%s1554_s17 + $0x700] sm:$0xff] %v874_v47  ;;  %1131 = vst [vmem:[%s1554_s17 + $0x708] sm:$0xff] %v875_v48  ;;  %v880_v59 = vmul.f32 0.0, %v624_v50 }
  0xd0   : > { %1132 = vst [vmem:[%s1554_s17 + $0x710] sm:$0xff] %v876_v49  ;;  %v626_v60 = vmax.f32 %v370_v46, 0.0  ;;  %v627_v61 = vmax.f32 %v371_v51, 0.0  ;;  %v628_v62 = vmax.f32 %v372_v52, 0.0  ;;  %v375_v63 = vld [vmem:[%s1533_s30 + $0x768] sm:$0xff]  ;;  %v376_v0 = vld [vmem:[%s1533_s30 + $0x770] sm:$0xff] }
  0xd1   : > { %1133 = vst [vmem:[%s1554_s17 + $0x718] sm:$0xff] %v877_v53  ;;  %1134 = vst [vmem:[%s1554_s17 + $0x720] sm:$0xff] %v878_v54  ;;  %v881_v1 = vmul.f32 0.0, %v625_v56  ;;  %v629_v2 = vmax.f32 %v373_v57, 0.0  ;;  %v630_v3 = vmax.f32 %v374_v58, 0.0  ;;  %v631_v4 = vmax.f32 %v375_v63, 0.0 }
  0xd2   : > { %1135 = vst [vmem:[%s1554_s17 + $0x728] sm:$0xff] %v879_v55  ;;  %v377_v5 = vld [vmem:[%s1533_s30 + $0x778] sm:$0xff]  ;;  %v378_v6 = vld [vmem:[%s1533_s30 + $0x780] sm:$0xff]  ;;  %1136 = vst [vmem:[%s1554_s17 + $0x730] sm:$0xff] %v880_v59  ;;  %v882_v7 = vmul.f32 0.0, %v626_v60  ;;  %v883_v8 = vmul.f32 0.0, %v627_v61 }
  0xd3   : > { %v884_v9 = vmul.f32 0.0, %v628_v62  ;;  %v632_v10 = vmax.f32 %v376_v0, 0.0  ;;  %v379_v11 = vld [vmem:[%s1533_s30 + $0x788] sm:$0xff]  ;;  %v380_v12 = vld [vmem:[%s1533_s30 + $0x790] sm:$0xff]  ;;  %1137 = vst [vmem:[%s1554_s17 + $0x738] sm:$0xff] %v881_v1  ;;  %v885_v13 = vmul.f32 0.0, %v629_v2 }
  0xd4   : > { %v886_v14 = vmul.f32 0.0, %v630_v3  ;;  %v887_v15 = vmul.f32 0.0, %v631_v4  ;;  %v633_v16 = vmax.f32 %v377_v5, 0.0  ;;  %v381_v17 = vld [vmem:[%s1533_s30 + $0x798] sm:$0xff]  ;;  %v382_v18 = vld [vmem:[%s1533_s30 + $0x7a0] sm:$0xff]  ;;  %1138 = vst [vmem:[%s1554_s17 + $0x740] sm:$0xff] %v882_v7 }
  0xd5   : > { %1139 = vst [vmem:[%s1554_s17 + $0x748] sm:$0xff] %v883_v8  ;;  %1140 = vst [vmem:[%s1554_s17 + $0x750] sm:$0xff] %v884_v9  ;;  %v888_v19 = vmul.f32 0.0, %v632_v10  ;;  %v634_v20 = vmax.f32 %v378_v6, 0.0  ;;  %v635_v21 = vmax.f32 %v379_v11, 0.0  ;;  %v636_v22 = vmax.f32 %v380_v12, 0.0 }
  0xd6   : > { %v383_v23 = vld [vmem:[%s1533_s30 + $0x7a8] sm:$0xff]  ;;  %v384_v24 = vld [vmem:[%s1533_s30 + $0x7b0] sm:$0xff]  ;;  %1141 = vst [vmem:[%s1554_s17 + $0x758] sm:$0xff] %v885_v13  ;;  %1142 = vst [vmem:[%s1554_s17 + $0x760] sm:$0xff] %v886_v14  ;;  %v889_v25 = vmul.f32 0.0, %v633_v16  ;;  %v637_v26 = vmax.f32 %v381_v17, 0.0 }
  0xd7   : > { %1143 = vst [vmem:[%s1554_s17 + $0x768] sm:$0xff] %v887_v15  ;;  %v638_v27 = vmax.f32 %v382_v18, 0.0  ;;  %v639_v28 = vmax.f32 %v383_v23, 0.0  ;;  %v385_v29 = vld [vmem:[%s1533_s30 + $0x7b8] sm:$0xff]  ;;  %v386_v30 = vld [vmem:[%s1533_s30 + $0x7c0] sm:$0xff]  ;;  %1144 = vst [vmem:[%s1554_s17 + $0x770] sm:$0xff] %v888_v19 }
  0xd8   : > { %v890_v31 = vmul.f32 0.0, %v634_v20  ;;  %v891_v32 = vmul.f32 0.0, %v635_v21  ;;  %v892_v33 = vmul.f32 0.0, %v636_v22  ;;  %v640_v34 = vmax.f32 %v384_v24, 0.0  ;;  %v387_v35 = vld [vmem:[%s1533_s30 + $0x7c8] sm:$0xff]  ;;  %v388_v36 = vld [vmem:[%s1533_s30 + $0x7d0] sm:$0xff] }
  0xd9   : > { %1145 = vst [vmem:[%s1554_s17 + $0x778] sm:$0xff] %v889_v25  ;;  %v893_v37 = vmul.f32 0.0, %v637_v26  ;;  %v894_v38 = vmul.f32 0.0, %v638_v27  ;;  %v895_v39 = vmul.f32 0.0, %v639_v28  ;;  %v641_v40 = vmax.f32 %v385_v29, 0.0  ;;  %v389_v41 = vld [vmem:[%s1533_s30 + $0x7d8] sm:$0xff] }
  0xda   : > { %v390_v42 = vld [vmem:[%s1533_s30 + $0x7e0] sm:$0xff]  ;;  %1146 = vst [vmem:[%s1554_s17 + $0x780] sm:$0xff] %v890_v31  ;;  %1147 = vst [vmem:[%s1554_s17 + $0x788] sm:$0xff] %v891_v32  ;;  %v896_v43 = vmul.f32 0.0, %v640_v34  ;;  %v642_v44 = vmax.f32 %v386_v30, 0.0  ;;  %v643_v45 = vmax.f32 %v387_v35, 0.0 }
  0xdb   : > { %1148 = vst [vmem:[%s1554_s17 + $0x790] sm:$0xff] %v892_v33  ;;  %v644_v46 = vmax.f32 %v388_v36, 0.0  ;;  %v391_v47 = vld [vmem:[%s1533_s30 + $0x7e8] sm:$0xff]  ;;  %v392_v48 = vld [vmem:[%s1533_s30 + $0x7f0] sm:$0xff]  ;;  %1149 = vst [vmem:[%s1554_s17 + $0x798] sm:$0xff] %v893_v37  ;;  %v897_v49 = vmul.f32 0.0, %v641_v40 }
  0xdc   : > { %1150 = vst [vmem:[%s1554_s17 + $0x7a0] sm:$0xff] %v894_v38  ;;  %1151 = vst [vmem:[%s1554_s17 + $0x7a8] sm:$0xff] %v895_v39  ;;  %v645_v50 = vmax.f32 %v389_v41, 0.0  ;;  %v646_v51 = vmax.f32 %v390_v42, 0.0  ;;  %v647_v52 = vmax.f32 %v391_v47, 0.0  ;;  %v393_v53 = vld [vmem:[%s1533_s30 + $0x7f8] sm:$0xff] }
  0xdd   : > { %1152 = vst [vmem:[%s1554_s17 + $0x7b0] sm:$0xff] %v896_v43  ;;  %v898_v54 = vmul.f32 0.0, %v642_v44  ;;  %v899_v55 = vmul.f32 0.0, %v643_v45  ;;  %v900_v56 = vmul.f32 0.0, %v644_v46  ;;  %v648_v57 = vmax.f32 %v392_v48, 0.0  ;;  %1153 = vst [vmem:[%s1554_s17 + $0x7b8] sm:$0xff] %v897_v49 }
  0xde   : > { %v901_v58 = vmul.f32 0.0, %v645_v50  ;;  %v902_v59 = vmul.f32 0.0, %v646_v51  ;;  %v903_v60 = vmul.f32 0.0, %v647_v52  ;;  %v649_v61 = vmax.f32 %v393_v53, 0.0  ;;  %s1163_s10 = scalar_lea.sflag [#allocation4], %s1527_s23  ;;  %s1348_s3 = scalar_lea.vmem %s2057_s27, 32768 }
  0xdf   : > { %1154 = vst [vmem:[%s1554_s17 + $0x7c0] sm:$0xff] %v898_v54  ;;  %1155 = vst [vmem:[%s1554_s17 + $0x7c8] sm:$0xff] %v899_v55  ;;  %v904_v62 = vmul.f32 0.0, %v648_v57  ;;  %p1349_p11 = scmp.ne.s32.totalorder %s2057_s27, %s1348_s3  ;;  %p2115_p12 = scmp.ne.s32.totalorder %s2111_s18, 0 }
  0xe0   : > { %1156 = vst [vmem:[%s1554_s17 + $0x7d0] sm:$0xff] %v900_v56  ;;  %1157 = vst [vmem:[%s1554_s17 + $0x7d8] sm:$0xff] %v901_v58  ;;  %v905_v63 = vmul.f32 0.0, %v649_v61  ;;  %s1417_s4 = smov [#allocation5]  }
  0xe1   : > { %1158 = vst [vmem:[%s1554_s17 + $0x7e0] sm:$0xff] %v902_v59  ;;  %1159 = vst [vmem:[%s1554_s17 + $0x7e8] sm:$0xff] %v903_v60  ;;  %p1350_p13 = pnand %p1349_p11, %p2115_p12  ;;  %s1352_s5 = sshll.u32 %s1417_s4, 4  ;;  %s1353_s5 = int_to_ptr.vmem [resolvable:$false] %s1352_s5 }
  0xe2   : > { %1160 = vst [vmem:[%s1554_s17 + $0x7f0] sm:$0xff] %v904_v62  ;;  %1161 = vst [vmem:[%s1554_s17 + $0x7f8] sm:$0xff] %v905_v63  ;;  %s1354_s11 = scalar_lea.vmem %s1353_s5, 65536  ;;  %p1355_p5 = scmp.lt.s32.totalorder %s2057_s27, %s1353_s5 }
  0xe3   : > { %p1351_p4 = pneg %p1350_p13  ;;  %p1356_p7 = scmp.lt.s32.totalorder %s1354_s11, %s1348_s3 }
  0xe5   : > { %p1357_p8 = por %p1356_p7, %p1355_p5 }
  0xe7   : > { %p1358_p10 = pnand %p1357_p8, %p1351_p4 }
  0xe9   : > { %1361 = shalt.err (!%p1358_p10)
}
  0xea   : > { %s1362_s13 = scalar_lea.hbm %s2055_s2, 32768  ;;  %s1366_s20 = scalar_lea.hbm %s2106_s1, 65536 }
  0xeb   : > { %p1363_p0 = scmp.ne.s32.totalorder %s2055_s2, %s1362_s13  ;;  %p1367_p1 = scmp.lt.s32.totalorder %s2055_s2, %s2106_s1 }
  0xec   : > { %p1368_p3 = scmp.lt.s32.totalorder %s1366_s20, %s1362_s13 }
  0xed   : > { %p1364_p2 = pnand %p1363_p0, %p2115_p12 }
  0xee   : > { %p1369_p6 = por %p1368_p3, %p1367_p1 }
  0xef   : > { %p1365_p9 = pneg %p1364_p2 }
  0xf1   : > { %p1370_p11 = pnand %p1369_p6, %p1365_p9 }
  0xf3   : > { %1373 = shalt.err (!%p1370_p11)
}
  0xf4   : > { %s1418_s24 = smov 1024   ;;  %s1419_s26 = smov 64  }
  0xf5   : > { %1272 = dma.vmem_to_hbm [thread:$0]  (%p2115_p12), %s2057_s27, 32768, %s2055_s2, %s1163_s10, %s1418_s24, %s1418_s24, %s1419_s26  }
  0xf6 PF: > { %s1192_s30 = sand.u32 1, %s1400_s6   ;;  %p2116_p13 = scmp.ne.s32.totalorder %s2112_s19, 0 }
  0xf7   : > { %p2117_p4 = scmp.ge.s32.totalorder %s1412_s9, 2  ;;  %s1193_s17 = scalar_lea.sflag [#allocation4], %s1192_s30 }
  0xf9   : > { %p1279_p5 = pnand %p2117_p4, %p2116_p13 }
  0xfb   : > { %p1280_p7 = pneg %p1279_p5 }
  0xfd   : > { %1395 = dma.done.wait (%p1280_p7), %s1193_s17, 32768  }
  0xfe   : > { %1397 = vsyncadd (%p1280_p7), %s1193_s17, 4294934528  ;;  %p14_p8 = scmp.ge.s32.totalorder %s1455_s12, 4   ;;  %s2118_s6 = smov %s1404_s7 }
  0xff   : > { %s2119_s7 = smov %s1408_s8  ;;  %s2120_s8 = smov %s1467_s15 }
 0x100   : > { %s2121_s9 = smov %s1455_s12  ;;  %16 = sbr.rel (!%p14_p8) target bundleno = 5 (0x5), region = 69 }
 0x105   :  { %1198 = vsyncpa [#allocation3], 1 }
 0x106   :  { %1200 = vsyncpa [#allocation3 + $0x1], 1 }
 0x107   :  { %1201 = vsyncpa [#allocation4], 1 }
 0x108   :  { %1203 = vsyncpa [#allocation4 + $0x1], 1 }

</bundles_post_ra>
